<compile_context>
chip_gen: v7x
topology: tpu7x:2x2x1
jax: 0.10.0
libtpu: 0.0.40
codegen_flags: <defaults>
</compile_context>

<pallas_src>
import math
import functools

import jax
import jax.numpy as jnp
from jax import lax
from jax.experimental import pallas as pl
from jax.experimental.pallas import tpu as pltpu


# ---------------------------------------------------------------------------
# Kernel 1: QKV projection  (x @ Wqkv^T + b), written head-major.
# ---------------------------------------------------------------------------
def qkv_proj_kernel(x_ref, wqkv_ref, bqkv_ref, q_ref, k_ref, v_ref,
                    *, num_heads: int, head_dim: int):
    # x_ref: (1, TS, E)   wqkv_ref: (E, 3E) bf16   bqkv_ref: (1, 3E) f32
    # q/k/v_ref: (1, H, TS, D) bf16
    x = x_ref[0].astype(jnp.bfloat16)                                   # (TS, E)
    qkv = jnp.dot(x, wqkv_ref[...], preferred_element_type=jnp.float32)
    qkv = qkv + bqkv_ref[...]                                           # (TS, 3E) f32

    E = num_heads * head_dim
    # Static (small) loop over heads: just slices + stores, no per-head matmuls.
    for h in range(num_heads):
        lo = h * head_dim
        hi = lo + head_dim
        q_ref[0, h] = qkv[:, lo:hi].astype(q_ref.dtype)
        k_ref[0, h] = qkv[:, E + lo:E + hi].astype(k_ref.dtype)
        v_ref[0, h] = qkv[:, 2 * E + lo:2 * E + hi].astype(v_ref.dtype)


# ---------------------------------------------------------------------------
# Kernel 2: causal flash attention (online softmax over K tiles).
# ---------------------------------------------------------------------------
def flash_attn_kernel(q_ref, k_ref, v_ref, o_ref, m_sc, l_sc, acc_sc,
                      *, scale: float, block_q: int, block_k: int):
    # q_ref: (1,1,TQ,D)  k_ref/v_ref: (1,1,TK,D)  o_ref: (1,1,TQ,D)
    qi = pl.program_id(2)
    ki = pl.program_id(3)

    @pl.when(ki == 0)
    def _init():
        m_sc[...] = jnp.full(m_sc.shape, -jnp.inf, m_sc.dtype)
        l_sc[...] = jnp.zeros(l_sc.shape, l_sc.dtype)
        acc_sc[...] = jnp.zeros(acc_sc.shape, acc_sc.dtype)

    # Skip K tiles entirely in the causal future of this Q tile (~2x fewer FLOPs).
    @pl.when(ki * block_k <= qi * block_q + (block_q - 1))
    def _compute():
        q = q_ref[0, 0]                                                  # (TQ, D) bf16
        k = k_ref[0, 0]                                                  # (TK, D) bf16
        v = v_ref[0, 0]                                                  # (TK, D) bf16

        # q @ k^T without materializing a transpose: contract head_dim of both.
        s = lax.dot_general(q, k, (((1,), (1,)), ((), ())),
                            preferred_element_type=jnp.float32)          # (TQ, TK)
        s = s * scale

        # Per-tile causal additive mask (flash_attn non-flash path uses -10000).
        row = qi * block_q + lax.broadcasted_iota(jnp.int32, s.shape, 0)
        col = ki * block_k + lax.broadcasted_iota(jnp.int32, s.shape, 1)
        s = s + jnp.where(col > row, jnp.float32(-10000.0), jnp.float32(0.0))

        m_prev = m_sc[...]
        m_new = jnp.maximum(m_prev, jnp.max(s, axis=-1, keepdims=True))
        alpha = jnp.exp(m_prev - m_new)
        p = jnp.exp(s - m_new)
        l_sc[...] = alpha * l_sc[...] + jnp.sum(p, axis=-1, keepdims=True)
        pv = lax.dot_general(p.astype(v.dtype), v, (((1,), (0,)), ((), ())),
                             preferred_element_type=jnp.float32)          # (TQ, D)
        acc_sc[...] = alpha * acc_sc[...] + pv
        m_sc[...] = m_new

    @pl.when(ki == pl.num_programs(3) - 1)
    def _finalize():
        inv_l = pl.reciprocal(l_sc[...], approx=True)
        o_ref[0, 0] = (acc_sc[...] * inv_l).astype(o_ref.dtype)


# ---------------------------------------------------------------------------
# Kernel 3: out-proj + residual + LN1 + FFN + residual + LN2.
# ---------------------------------------------------------------------------
def out_ffn_kernel(x_ref, attn_ref, wout_ref, bout_ref, w1_ref, b1_ref,
                   w2_ref, b2_ref, g1_ref, be1_ref, g2_ref, be2_ref, o_ref,
                   *, num_heads: int, eps: float):
    x = x_ref[0].astype(jnp.float32)                                     # (TS, E)

    # Gather per-head attention outputs (TS, D) back into (TS, E).
    heads = [attn_ref[0, h] for h in range(num_heads)]                   # bf16
    attn = jnp.concatenate(heads, axis=-1)                               # (TS, E) bf16

    o = jnp.dot(attn, wout_ref[...], preferred_element_type=jnp.float32)
    o = o + bout_ref[...]

    # residual + LayerNorm1 (dropout is identity in eval mode)
    y = x + o
    mu = jnp.mean(y, axis=-1, keepdims=True)
    var = jnp.mean((y - mu) * (y - mu), axis=-1, keepdims=True)
    y1 = (y - mu) * lax.rsqrt(var + eps) * g1_ref[...] + be1_ref[...]

    # FFN (bf16 operands, f32 accumulation), tiled to (TS, F)
    h1 = jnp.dot(y1.astype(jnp.bfloat16), w1_ref[...],
                 preferred_element_type=jnp.float32) + b1_ref[...]
    h1 = jnp.maximum(h1, 0.0)
    f = jnp.dot(h1.astype(jnp.bfloat16), w2_ref[...],
                preferred_element_type=jnp.float32) + b2_ref[...]

    # residual + LayerNorm2
    z = y1 + f
    mu2 = jnp.mean(z, axis=-1, keepdims=True)
    var2 = jnp.mean((z - mu2) * (z - mu2), axis=-1, keepdims=True)
    z = (z - mu2) * lax.rsqrt(var2 + eps) * g2_ref[...] + be2_ref[...]

    o_ref[0] = z.astype(o_ref.dtype)


# ---------------------------------------------------------------------------
# Parameter prep (ONE-TIME: transpose + cast weights to bf16, biases to rows)
# ---------------------------------------------------------------------------
def prepare_params(params):
    row = lambda v: jnp.asarray(v, jnp.float32).reshape(1, -1)
    w = lambda v: jnp.asarray(v).T.astype(jnp.bfloat16)
    return {
        "wqkv_t": w(params["wqkv"]), "bqkv": row(params["bqkv"]),
        "wout_t": w(params["wout"]), "bout": row(params["bout"]),
        "w1_t": w(params["w1"]), "b1": row(params["b1"]),
        "w2_t": w(params["w2"]), "b2": row(params["b2"]),
        "g1": row(params["g1"]), "be1": row(params["be1"]),
        "g2": row(params["g2"]), "be2": row(params["be2"]),
    }


def _full_spec(a):
    n = a.ndim
    return pl.BlockSpec(a.shape, lambda *args, n=n: (0,) * n)


# ---------------------------------------------------------------------------
# Wrapper
# ---------------------------------------------------------------------------
def transformer_layer(x, prep, *, num_heads: int, eps: float = 1e-5,
                      block_q: int = 128, block_k: int = 128, block_s: int = 128):
    B, S, E = x.shape
    D = E // num_heads
    F = prep["w1_t"].shape[1]

    bs = min(block_s, S)
    bq = min(block_q, S)
    bk = min(block_k, S)
    assert S % bs == 0 and S % bq == 0 and S % bk == 0, "seq must divide tile sizes"

    # ---- 1) QKV projection -------------------------------------------------
    q, k, v = pl.pallas_call(
        functools.partial(qkv_proj_kernel, num_heads=num_heads, head_dim=D),
        out_shape=tuple(jax.ShapeDtypeStruct((B, num_heads, S, D), jnp.bfloat16)
                        for _ in range(3)),
        grid_spec=pltpu.PrefetchScalarGridSpec(
            num_scalar_prefetch=0,
            grid=(B, S // bs),
            in_specs=[
                pl.BlockSpec((1, bs, E), lambda b, si: (b, si, 0)),
                _full_spec(prep["wqkv_t"]),
                _full_spec(prep["bqkv"]),
            ],
            out_specs=[pl.BlockSpec((1, num_heads, bs, D), lambda b, si: (b, 0, si, 0))
                       for _ in range(3)],
        ),
        compiler_params=pltpu.CompilerParams(
            dimension_semantics=("parallel", "parallel")),
    )(x, prep["wqkv_t"], prep["bqkv"])

    # ---- 2) causal flash attention ------------------------------------------
    attn = pl.pallas_call(
        functools.partial(flash_attn_kernel, scale=1.0 / math.sqrt(D),
                          block_q=bq, block_k=bk),
        out_shape=jax.ShapeDtypeStruct((B, num_heads, S, D), jnp.bfloat16),
        grid_spec=pltpu.PrefetchScalarGridSpec(
            num_scalar_prefetch=0,
            grid=(B, num_heads, S // bq, S // bk),
            in_specs=[
                pl.BlockSpec((1, 1, bq, D), lambda b, h, qi, ki: (b, h, qi, 0)),
                pl.BlockSpec((1, 1, bk, D), lambda b, h, qi, ki: (b, h, ki, 0)),
                pl.BlockSpec((1, 1, bk, D), lambda b, h, qi, ki: (b, h, ki, 0)),
            ],
            out_specs=pl.BlockSpec((1, 1, bq, D), lambda b, h, qi, ki: (b, h, qi, 0)),
            scratch_shapes=[
                pltpu.VMEM((bq, 1), jnp.float32),   # running max
                pltpu.VMEM((bq, 1), jnp.float32),   # running denom
                pltpu.VMEM((bq, D), jnp.float32),   # accumulator
            ],
        ),
        compiler_params=pltpu.CompilerParams(
            dimension_semantics=("parallel", "parallel", "parallel", "arbitrary")),
    )(q, k, v)

    # ---- 3) out-proj + residuals + LayerNorms + FFN --------------------------
    args = (x, attn,
            prep["wout_t"], prep["bout"],
            prep["w1_t"], prep["b1"],
            prep["w2_t"], prep["b2"],
            prep["g1"], prep["be1"], prep["g2"], prep["be2"])

    in_specs = [
        pl.BlockSpec((1, bs, E), lambda b, si: (b, si, 0)),
        pl.BlockSpec((1, num_heads, bs, D), lambda b, si: (b, 0, si, 0)),
    ] + [_full_spec(a) for a in args[2:]]

    # TODO(synk): for real model sizes (E>=1024, F=4E) on v7x, additionally tile
    # the FFN weights over F/E blocks and set vmem_limit_bytes explicitly.
    out = pl.pallas_call(
        functools.partial(out_ffn_kernel, num_heads=num_heads, eps=eps),
        out_shape=jax.ShapeDtypeStruct((B, S, E), x.dtype),
        grid_spec=pltpu.PrefetchScalarGridSpec(
            num_scalar_prefetch=0,
            grid=(B, S // bs),
            in_specs=in_specs,
            out_specs=pl.BlockSpec((1, bs, E), lambda b, si: (b, si, 0)),
        ),
        compiler_params=pltpu.CompilerParams(
            dimension_semantics=("parallel", "parallel")),
    )(*args)

    return out


# ---------------------------------------------------------------------------
# Pure-JAX reference (f32) for sanity check
# ---------------------------------------------------------------------------
def transformer_layer_ref(x, params, *, num_heads: int, eps: float = 1e-5):
    B, S, E = x.shape
    D = E // num_heads
    qkv = x @ params["wqkv"].T + params["bqkv"]                 # (B,S,3E)
    q, k, v = jnp.split(qkv, 3, axis=-1)
    q = q.reshape(B, S, num_heads, D)
    k = k.reshape(B, S, num_heads, D)
    v = v.reshape(B, S, num_heads, D)
    scale = 1.0 / math.sqrt(D)
    scores = jnp.einsum("bthd,bshd->bhts", q, k * scale)
    mask = jnp.triu(jnp.full((S, S), -10000.0, jnp.float32), 1)
    scores = scores + mask
    p = jax.nn.softmax(scores, axis=-1)
    o = jnp.einsum("bhts,bshd->bthd", p, v).reshape(B, S, E)
    o = o @ params["wout"].T + params["bout"]

    def ln(y, g, b):
        mu = y.mean(-1, keepdims=True)
        var = ((y - mu) ** 2).mean(-1, keepdims=True)
        return (y - mu) * jax.lax.rsqrt(var + eps) * g + b

    y1 = ln(x + o, params["g1"], params["be1"])
    f = jax.nn.relu(y1 @ params["w1"].T + params["b1"]) @ params["w2"].T + params["b2"]
    return ln(y1 + f, params["g2"], params["be2"])


# ---------------------------------------------------------------------------
if __name__ == "__main__":
    # Small-but-tiled shapes consistent with the module.
    B, S, E, H, F = 2, 256, 128, 4, 256

    key = jax.random.PRNGKey(0)
    ks = jax.random.split(key, 10)
    init = lambda k, shape: (0.02 * jax.random.normal(k, shape)).astype(jnp.float32)

    params = {
        "wqkv": init(ks[0], (3 * E, E)),
        "bqkv": init(ks[1], (3 * E,)),
        "wout": init(ks[2], (E, E)),
        "bout": init(ks[3], (E,)),
        "w1":   init(ks[4], (F, E)),
        "b1":   init(ks[5], (F,)),
        "w2":   init(ks[6], (E, F)),
        "b2":   init(ks[7], (E,)),
        "g1":   jnp.ones((E,), jnp.float32),
        "be1":  jnp.zeros((E,), jnp.float32),
        "g2":   jnp.ones((E,), jnp.float32),
        "be2":  jnp.zeros((E,), jnp.float32),
    }

    x = jax.random.normal(ks[8], (B, S, E), jnp.float32)

    prep = prepare_params(params)          # one-time weight transpose + bf16 cast
    out = transformer_layer(x, prep, num_heads=H, block_q=128, block_k=128, block_s=128)
    out = jax.block_until_ready(out)

    ref = transformer_layer_ref(x, params, num_heads=H)
    assert out.shape == (B, S, E)
    max_err = float(jnp.max(jnp.abs(out - ref)))
    # bf16 matmul operands with f32 accumulation -> bf16-level tolerance
    assert jnp.allclose(out, ref, atol=5e-2, rtol=5e-2), f"mismatch vs reference (max |err| = {max_err})"

    print("KERNEL_OK")
</pallas_src>

<mosaic_0001>
module attributes {stable_mosaic.version = 11 : i64} {
  func.func @qkv_proj_kernel(%arg0: i32, %arg1: i32, %arg2: memref<1x128x128xf32, #tpu.memory_space<vmem>>, %arg3: memref<128x384xbf16, #tpu.memory_space<vmem>>, %arg4: memref<1x384xf32, #tpu.memory_space<vmem>>, %arg5: memref<1x4x128x32xbf16, #tpu.memory_space<vmem>>, %arg6: memref<1x4x128x32xbf16, #tpu.memory_space<vmem>>, %arg7: memref<1x4x128x32xbf16, #tpu.memory_space<vmem>>) attributes {dimension_semantics = [#tpu.dimension_semantics<parallel>, #tpu.dimension_semantics<parallel>], iteration_bounds = array<i64: 2, 2>, scalar_prefetch = 0 : i64, scratch_operands = 0 : i64, tpu.core_type = #tpu.core_type<tc>, window_params = [{transform_indices = @transform_0, window_bounds = array<i64: 1, 128, 128>}, {pipeline_mode = #tpu.pipeline_mode<synchronous>, transform_indices = @transform_1, window_bounds = array<i64: 128, 384>}, {pipeline_mode = #tpu.pipeline_mode<synchronous>, transform_indices = @transform_2, window_bounds = array<i64: 1, 384>}, {transform_indices = @transform_3, window_bounds = array<i64: 1, 4, 128, 32>}, {transform_indices = @transform_4, window_bounds = array<i64: 1, 4, 128, 32>}, {transform_indices = @transform_5, window_bounds = array<i64: 1, 4, 128, 32>}]} {
    %c0 = arith.constant 0 : index
    %c0_0 = arith.constant 0 : index
    %c0_1 = arith.constant 0 : index
    %0 = vector.load %arg2[%c0, %c0_0, %c0_1] : memref<1x128x128xf32, #tpu.memory_space<vmem>>, vector<1x128x128xf32>
    %1 = vector.shape_cast %0 : vector<1x128x128xf32> to vector<128x128xf32>
    %2 = arith.truncf %1 : vector<128x128xf32> to vector<128x128xbf16>
    %c0_2 = arith.constant 0 : index
    %c0_3 = arith.constant 0 : index
    %3 = vector.load %arg3[%c0_2, %c0_3] : memref<128x384xbf16, #tpu.memory_space<vmem>>, vector<128x384xbf16>
    %cst = arith.constant dense<0.000000e+00> : vector<128x384xf32>
    %4 = tpu.matmul %2, %3, %cst {dimension_numbers = #tpu.dot_dimension_numbers<[1], [0], [0], [1], [0, 0, 1, 1], [], []>} : vector<128x128xbf16>, vector<128x384xbf16>, vector<128x384xf32> -> vector<128x384xf32>
    %c0_4 = arith.constant 0 : index
    %c0_5 = arith.constant 0 : index
    %5 = vector.load %arg4[%c0_4, %c0_5] : memref<1x384xf32, #tpu.memory_space<vmem>>, vector<1x384xf32>
    %6 = vector.broadcast %5 : vector<1x384xf32> to vector<128x384xf32>
    %7 = arith.addf %4, %6 : vector<128x384xf32>
    %8 = vector.extract_strided_slice %7 {offsets = [0, 0], sizes = [128, 32], strides = [1, 1]} : vector<128x384xf32> to vector<128x32xf32>
    %9 = arith.truncf %8 : vector<128x32xf32> to vector<128x32xbf16>
    %c0_6 = arith.constant 0 : index
    %c0_7 = arith.constant 0 : index
    %c0_8 = arith.constant 0 : index
    %c0_9 = arith.constant 0 : index
    %10 = vector.load %arg5[%c0_6, %c0_7, %c0_8, %c0_9] : memref<1x4x128x32xbf16, #tpu.memory_space<vmem>>, vector<1x1x128x32xbf16>
    %11 = vector.shape_cast %10 : vector<1x1x128x32xbf16> to vector<128x32xbf16>
    %12 = vector.shape_cast %9 : vector<128x32xbf16> to vector<1x1x128x32xbf16>
    tpu.vector_store %arg5[%c0_6, %c0_7, %c0_8, %c0_9], %12 {strides = array<i32>} : memref<1x4x128x32xbf16, #tpu.memory_space<vmem>>, vector<1x1x128x32xbf16>,
    %13 = vector.extract_strided_slice %7 {offsets = [0, 128], sizes = [128, 32], strides = [1, 1]} : vector<128x384xf32> to vector<128x32xf32>
    %14 = arith.truncf %13 : vector<128x32xf32> to vector<128x32xbf16>
    %c0_10 = arith.constant 0 : index
    %c0_11 = arith.constant 0 : index
    %c0_12 = arith.constant 0 : index
    %c0_13 = arith.constant 0 : index
    %15 = vector.load %arg6[%c0_10, %c0_11, %c0_12, %c0_13] : memref<1x4x128x32xbf16, #tpu.memory_space<vmem>>, vector<1x1x128x32xbf16>
    %16 = vector.shape_cast %15 : vector<1x1x128x32xbf16> to vector<128x32xbf16>
    %17 = vector.shape_cast %14 : vector<128x32xbf16> to vector<1x1x128x32xbf16>
    tpu.vector_store %arg6[%c0_10, %c0_11, %c0_12, %c0_13], %17 {strides = array<i32>} : memref<1x4x128x32xbf16, #tpu.memory_space<vmem>>, vector<1x1x128x32xbf16>,
    %18 = vector.extract_strided_slice %7 {offsets = [0, 256], sizes = [128, 32], strides = [1, 1]} : vector<128x384xf32> to vector<128x32xf32>
    %19 = arith.truncf %18 : vector<128x32xf32> to vector<128x32xbf16>
    %c0_14 = arith.constant 0 : index
    %c0_15 = arith.constant 0 : index
    %c0_16 = arith.constant 0 : index
    %c0_17 = arith.constant 0 : index
    %20 = vector.load %arg7[%c0_14, %c0_15, %c0_16, %c0_17] : memref<1x4x128x32xbf16, #tpu.memory_space<vmem>>, vector<1x1x128x32xbf16>
    %21 = vector.shape_cast %20 : vector<1x1x128x32xbf16> to vector<128x32xbf16>
    %22 = vector.shape_cast %19 : vector<128x32xbf16> to vector<1x1x128x32xbf16>
    tpu.vector_store %arg7[%c0_14, %c0_15, %c0_16, %c0_17], %22 {strides = array<i32>} : memref<1x4x128x32xbf16, #tpu.memory_space<vmem>>, vector<1x1x128x32xbf16>,
    %23 = vector.extract_strided_slice %7 {offsets = [0, 32], sizes = [128, 32], strides = [1, 1]} : vector<128x384xf32> to vector<128x32xf32>
    %24 = arith.truncf %23 : vector<128x32xf32> to vector<128x32xbf16>
    %c0_18 = arith.constant 0 : index
    %c1 = arith.constant 1 : index
    %c0_19 = arith.constant 0 : index
    %c0_20 = arith.constant 0 : index
    %25 = vector.load %arg5[%c0_18, %c1, %c0_19, %c0_20] : memref<1x4x128x32xbf16, #tpu.memory_space<vmem>>, vector<1x1x128x32xbf16>
    %26 = vector.shape_cast %25 : vector<1x1x128x32xbf16> to vector<128x32xbf16>
    %27 = vector.shape_cast %24 : vector<128x32xbf16> to vector<1x1x128x32xbf16>
    tpu.vector_store %arg5[%c0_18, %c1, %c0_19, %c0_20], %27 {strides = array<i32>} : memref<1x4x128x32xbf16, #tpu.memory_space<vmem>>, vector<1x1x128x32xbf16>,
    %28 = vector.extract_strided_slice %7 {offsets = [0, 160], sizes = [128, 32], strides = [1, 1]} : vector<128x384xf32> to vector<128x32xf32>
    %29 = arith.truncf %28 : vector<128x32xf32> to vector<128x32xbf16>
    %c0_21 = arith.constant 0 : index
    %c1_22 = arith.constant 1 : index
    %c0_23 = arith.constant 0 : index
    %c0_24 = arith.constant 0 : index
    %30 = vector.load %arg6[%c0_21, %c1_22, %c0_23, %c0_24] : memref<1x4x128x32xbf16, #tpu.memory_space<vmem>>, vector<1x1x128x32xbf16>
    %31 = vector.shape_cast %30 : vector<1x1x128x32xbf16> to vector<128x32xbf16>
    %32 = vector.shape_cast %29 : vector<128x32xbf16> to vector<1x1x128x32xbf16>
    tpu.vector_store %arg6[%c0_21, %c1_22, %c0_23, %c0_24], %32 {strides = array<i32>} : memref<1x4x128x32xbf16, #tpu.memory_space<vmem>>, vector<1x1x128x32xbf16>,
    %33 = vector.extract_strided_slice %7 {offsets = [0, 288], sizes = [128, 32], strides = [1, 1]} : vector<128x384xf32> to vector<128x32xf32>
    %34 = arith.truncf %33 : vector<128x32xf32> to vector<128x32xbf16>
    %c0_25 = arith.constant 0 : index
    %c1_26 = arith.constant 1 : index
    %c0_27 = arith.constant 0 : index
    %c0_28 = arith.constant 0 : index
    %35 = vector.load %arg7[%c0_25, %c1_26, %c0_27, %c0_28] : memref<1x4x128x32xbf16, #tpu.memory_space<vmem>>, vector<1x1x128x32xbf16>
    %36 = vector.shape_cast %35 : vector<1x1x128x32xbf16> to vector<128x32xbf16>
    %37 = vector.shape_cast %34 : vector<128x32xbf16> to vector<1x1x128x32xbf16>
    tpu.vector_store %arg7[%c0_25, %c1_26, %c0_27, %c0_28], %37 {strides = array<i32>} : memref<1x4x128x32xbf16, #tpu.memory_space<vmem>>, vector<1x1x128x32xbf16>,
    %38 = vector.extract_strided_slice %7 {offsets = [0, 64], sizes = [128, 32], strides = [1, 1]} : vector<128x384xf32> to vector<128x32xf32>
    %39 = arith.truncf %38 : vector<128x32xf32> to vector<128x32xbf16>
    %c0_29 = arith.constant 0 : index
    %c2 = arith.constant 2 : index
    %c0_30 = arith.constant 0 : index
    %c0_31 = arith.constant 0 : index
    %40 = vector.load %arg5[%c0_29, %c2, %c0_30, %c0_31] : memref<1x4x128x32xbf16, #tpu.memory_space<vmem>>, vector<1x1x128x32xbf16>
    %41 = vector.shape_cast %40 : vector<1x1x128x32xbf16> to vector<128x32xbf16>
    %42 = vector.shape_cast %39 : vector<128x32xbf16> to vector<1x1x128x32xbf16>
    tpu.vector_store %arg5[%c0_29, %c2, %c0_30, %c0_31], %42 {strides = array<i32>} : memref<1x4x128x32xbf16, #tpu.memory_space<vmem>>, vector<1x1x128x32xbf16>,
    %43 = vector.extract_strided_slice %7 {offsets = [0, 192], sizes = [128, 32], strides = [1, 1]} : vector<128x384xf32> to vector<128x32xf32>
    %44 = arith.truncf %43 : vector<128x32xf32> to vector<128x32xbf16>
    %c0_32 = arith.constant 0 : index
    %c2_33 = arith.constant 2 : index
    %c0_34 = arith.constant 0 : index
    %c0_35 = arith.constant 0 : index
    %45 = vector.load %arg6[%c0_32, %c2_33, %c0_34, %c0_35] : memref<1x4x128x32xbf16, #tpu.memory_space<vmem>>, vector<1x1x128x32xbf16>
    %46 = vector.shape_cast %45 : vector<1x1x128x32xbf16> to vector<128x32xbf16>
    %47 = vector.shape_cast %44 : vector<128x32xbf16> to vector<1x1x128x32xbf16>
    tpu.vector_store %arg6[%c0_32, %c2_33, %c0_34, %c0_35], %47 {strides = array<i32>} : memref<1x4x128x32xbf16, #tpu.memory_space<vmem>>, vector<1x1x128x32xbf16>,
    %48 = vector.extract_strided_slice %7 {offsets = [0, 320], sizes = [128, 32], strides = [1, 1]} : vector<128x384xf32> to vector<128x32xf32>
    %49 = arith.truncf %48 : vector<128x32xf32> to vector<128x32xbf16>
    %c0_36 = arith.constant 0 : index
    %c2_37 = arith.constant 2 : index
    %c0_38 = arith.constant 0 : index
    %c0_39 = arith.constant 0 : index
    %50 = vector.load %arg7[%c0_36, %c2_37, %c0_38, %c0_39] : memref<1x4x128x32xbf16, #tpu.memory_space<vmem>>, vector<1x1x128x32xbf16>
    %51 = vector.shape_cast %50 : vector<1x1x128x32xbf16> to vector<128x32xbf16>
    %52 = vector.shape_cast %49 : vector<128x32xbf16> to vector<1x1x128x32xbf16>
    tpu.vector_store %arg7[%c0_36, %c2_37, %c0_38, %c0_39], %52 {strides = array<i32>} : memref<1x4x128x32xbf16, #tpu.memory_space<vmem>>, vector<1x1x128x32xbf16>,
    %53 = vector.extract_strided_slice %7 {offsets = [0, 96], sizes = [128, 32], strides = [1, 1]} : vector<128x384xf32> to vector<128x32xf32>
    %54 = arith.truncf %53 : vector<128x32xf32> to vector<128x32xbf16>
    %c0_40 = arith.constant 0 : index
    %c3 = arith.constant 3 : index
    %c0_41 = arith.constant 0 : index
    %c0_42 = arith.constant 0 : index
    %55 = vector.load %arg5[%c0_40, %c3, %c0_41, %c0_42] : memref<1x4x128x32xbf16, #tpu.memory_space<vmem>>, vector<1x1x128x32xbf16>
    %56 = vector.shape_cast %55 : vector<1x1x128x32xbf16> to vector<128x32xbf16>
    %57 = vector.shape_cast %54 : vector<128x32xbf16> to vector<1x1x128x32xbf16>
    tpu.vector_store %arg5[%c0_40, %c3, %c0_41, %c0_42], %57 {strides = array<i32>} : memref<1x4x128x32xbf16, #tpu.memory_space<vmem>>, vector<1x1x128x32xbf16>,
    %58 = vector.extract_strided_slice %7 {offsets = [0, 224], sizes = [128, 32], strides = [1, 1]} : vector<128x384xf32> to vector<128x32xf32>
    %59 = arith.truncf %58 : vector<128x32xf32> to vector<128x32xbf16>
    %c0_43 = arith.constant 0 : index
    %c3_44 = arith.constant 3 : index
    %c0_45 = arith.constant 0 : index
    %c0_46 = arith.constant 0 : index
    %60 = vector.load %arg6[%c0_43, %c3_44, %c0_45, %c0_46] : memref<1x4x128x32xbf16, #tpu.memory_space<vmem>>, vector<1x1x128x32xbf16>
    %61 = vector.shape_cast %60 : vector<1x1x128x32xbf16> to vector<128x32xbf16>
    %62 = vector.shape_cast %59 : vector<128x32xbf16> to vector<1x1x128x32xbf16>
    tpu.vector_store %arg6[%c0_43, %c3_44, %c0_45, %c0_46], %62 {strides = array<i32>} : memref<1x4x128x32xbf16, #tpu.memory_space<vmem>>, vector<1x1x128x32xbf16>,
    %63 = vector.extract_strided_slice %7 {offsets = [0, 352], sizes = [128, 32], strides = [1, 1]} : vector<128x384xf32> to vector<128x32xf32>
    %64 = arith.truncf %63 : vector<128x32xf32> to vector<128x32xbf16>
    %c0_47 = arith.constant 0 : index
    %c3_48 = arith.constant 3 : index
    %c0_49 = arith.constant 0 : index
    %c0_50 = arith.constant 0 : index
    %65 = vector.load %arg7[%c0_47, %c3_48, %c0_49, %c0_50] : memref<1x4x128x32xbf16, #tpu.memory_space<vmem>>, vector<1x1x128x32xbf16>
    %66 = vector.shape_cast %65 : vector<1x1x128x32xbf16> to vector<128x32xbf16>
    %67 = vector.shape_cast %64 : vector<128x32xbf16> to vector<1x1x128x32xbf16>
    tpu.vector_store %arg7[%c0_47, %c3_48, %c0_49, %c0_50], %67 {strides = array<i32>} : memref<1x4x128x32xbf16, #tpu.memory_space<vmem>>, vector<1x1x128x32xbf16>,
    return
  }
  func.func @transform_0(%arg0: i32, %arg1: i32) -> (i32, i32, i32) {
    %c0_i32 = arith.constant 0 : i32
    %c0_i32_0 = arith.constant 0 : i32
    return %arg0, %arg1, %c0_i32 : i32, i32, i32
  }
  func.func @transform_1(%arg0: i32, %arg1: i32) -> (i32, i32) {
    %c0_i32 = arith.constant 0 : i32
    %c0_i32_0 = arith.constant 0 : i32
    %c0_i32_1 = arith.constant 0 : i32
    return %c0_i32, %c0_i32_0 : i32, i32
  }
  func.func @transform_2(%arg0: i32, %arg1: i32) -> (i32, i32) {
    %c0_i32 = arith.constant 0 : i32
    %c0_i32_0 = arith.constant 0 : i32
    %c0_i32_1 = arith.constant 0 : i32
    return %c0_i32, %c0_i32_0 : i32, i32
  }
  func.func @transform_3(%arg0: i32, %arg1: i32) -> (i32, i32, i32, i32) {
    %c0_i32 = arith.constant 0 : i32
    %c0_i32_0 = arith.constant 0 : i32
    %c0_i32_1 = arith.constant 0 : i32
    return %arg0, %c0_i32, %arg1, %c0_i32_0 : i32, i32, i32, i32
  }
  func.func @transform_4(%arg0: i32, %arg1: i32) -> (i32, i32, i32, i32) {
    %c0_i32 = arith.constant 0 : i32
    %c0_i32_0 = arith.constant 0 : i32
    %c0_i32_1 = arith.constant 0 : i32
    return %arg0, %c0_i32, %arg1, %c0_i32_0 : i32, i32, i32, i32
  }
  func.func @transform_5(%arg0: i32, %arg1: i32) -> (i32, i32, i32, i32) {
    %c0_i32 = arith.constant 0 : i32
    %c0_i32_0 = arith.constant 0 : i32
    %c0_i32_1 = arith.constant 0 : i32
    return %arg0, %c0_i32, %arg1, %c0_i32_0 : i32, i32, i32, i32
  }
}

</mosaic_0001>

<bundles_post_ra>
// kernel: tpu_custom_call.1
= control target key start
LH: loop header
LB: loop body
LE: loop exit
PB: predicated region body
PF: predicated region fallthrough
CT: control target
= control target key end

     0   :  { %s4552_s0 = inlined_call_operand.hbm [shape: f32[2,256,128], index: 0, kind: input, shape index: {}]   ;;  %s4553_s1 = inlined_call_operand.hbm [shape: bf16[128,384], index: 1, kind: input, shape index: {}]   ;;  %s4554_s2 = inlined_call_operand.vmem [shape: f32[1,384], index: 2, kind: input, shape index: {}]   ;;  %s4555_s3 = inlined_call_operand.vmem [shape: bf16[2,4,256,32], index: 3, kind: output, shape index: {0}]   ;;  %s4556_s4 = inlined_call_operand.vmem [shape: bf16[2,4,256,32], index: 4, kind: output, shape index: {1}]   ;;  %s4557_s5 = inlined_call_operand.vmem [shape: bf16[2,4,256,32], index: 5, kind: output, shape index: {2}]  }
   0x1   :  { %4563 = sst [smem:[#allocation12_spill]] %s4553_s1 }
   0x2   :  { %4564 = sst [smem:[#allocation13_spill]] %s4555_s3 }
   0x3   :  { %4565 = sst [smem:[#allocation14_spill]] %s4556_s4 }
   0x4   :  { %4566 = sst [smem:[#allocation15_spill]] %s4557_s5 }
   0x5   :  { %11 = vsyncpa [#allocation3], 0 }
   0x6   :  { %13 = vsyncpa [#allocation3 + $0x1], 0 }
   0x7   :  { %14 = vsyncpa [#allocation5], 0  ;;  %s3224_s18 = smov 0   ;;  %s3226_s19 = smov 0  }
   0x8   :  { %s3228_s20 = smov 0   ;;  %s3230_s21 = smov 0  }
   0x9   :  { %s3232_s22 = smov 0   ;;  %s3234_s23 = smov 0  }
   0xa   :  { %s3236_s24 = smov 0   ;;  %s3238_s25 = smov 0  }
   0xb LB: > { %s2591_s26 = sadd.s32 4294967295, %s3182_s25   ;;  %p54_p0 = scmp.ne.s32.totalorder %s3158_s19, %s3154_s18  ;;  %s3182_s25 = sphi %s3238_s25, %s20_s25   ;;  %s3178_s24 = sphi %s3236_s24, %s4591_s24   ;;  %s3174_s23 = sphi %s3234_s23, %s4590_s23   ;;  %s3170_s22 = sphi %s3232_s22, %s4589_s22   ;;  %s3166_s21 = sphi %s3230_s21, %s4588_s21   ;;  %s3162_s20 = sphi %s3228_s20, %s4587_s20   ;;  %s3158_s19 = sphi %s3226_s19, %s4586_s19   ;;  %s3154_s18 = sphi %s3224_s18, %s4585_s18  }
   0xc   : > { %p3264_p1 = scmp.eq.s32.totalorder %s2591_s26, 0  ;;  %p3268_p2 = scmp.eq.s32.totalorder %s2591_s26, 3 }
   0xd   : > { %p2593_p3 = scmp.ge.s32.totalorder %s3182_s25, 1  ;;  %p191_p4 = scmp.lt.s32.totalorder %s3182_s25, 5 }
   0xe   : > { %s4567_s27 = scalar_select %p3264_p1, 1, 0 }
   0xf   : > { %s4568_s28 = scalar_select %p3268_p2, 1, 0 }
  0x10   : > { %p3276_p5 = por %p3264_p1, %p54_p0  ;;  %p3280_p6 = pnand %p2593_p3, %p191_p4 }
  0x11   : > { %s3184_s6 = smov [#allocation4]   ;;  %s4572_s1 = sld [smem:[#allocation12_spill]] }
  0x12   : > { %s4569_s29 = scalar_select %p3276_p5, 1, 0 }
  0x13   : > { %s4570_s30 = scalar_select %p3280_p6, 1, 0 }
  0x14   : > { %s203_s7 = sshll.u32 %s3184_s6, 4  ;;  %p2938_p7 = pneg %p3280_p6  ;;  %s204_s7 = int_to_ptr.vmem [resolvable:$true] %s203_s7 }
  0x16   : > { %p3288_p8 = pnand %p2938_p7, %p3264_p1 }
  0x17   : > { %s3054_s11 = scalar_lea.hbm %s4572_s1, 3072 }
  0x18   : > { %p3055_p9 = scmp.ne.s32.totalorder %s4572_s1, %s3054_s11  ;;  %p3056_p10 = pneg %p3288_p8 }
  0x19   : > { %p3061_p13 = scmp.lt.u32.totalorder %s3054_s11, %s4572_s1 }
  0x1a   : > { %p3057_p11 = pnand %p3056_p10, %p3055_p9 }
  0x1c   : > { %p3058_p12 = pneg %p3057_p11 }
  0x1e   : > { %p3063_p0 = pnand %p3061_p13, %p3058_p12 }
  0x20   : > { %3066 = shalt.err (!%p3063_p0)
}
  0x21   : > { %s3067_s16 = scalar_lea.vmem %s204_s7, 3072  ;;  %p3075_p1 = scmp.lt.s32.totalorder %s204_s7, %s204_s7 }
  0x22   : > { %p3068_p3 = scmp.ne.s32.totalorder %s204_s7, %s3067_s16  ;;  %p3076_p5 = scmp.lt.s32.totalorder %s3067_s16, %s3067_s16 }
  0x24   : > { %p3070_p4 = pnand %p3068_p3, %p3056_p10  ;;  %p3077_p6 = por %p3076_p5, %p3075_p1 }
  0x26   : > { %p3071_p7 = pneg %p3070_p4 }
  0x28   : > { %p3078_p2 = pnand %p3077_p6, %p3071_p7 }
  0x2a   : > { %3081 = shalt.err (!%p3078_p2)
}
  0x2b   : > { %s3185_s17 = smov 192   ;;  %s3186_s18 = smov 12  }
  0x2c   : > { %2941 = dma.hbm_to_vmem [thread:$0]  (!%p3288_p8), %s4572_s1, 3072, %s204_s7, [#allocation5], %s3185_s17, %s3185_s17, %s3186_s18  }
  0x2d   : > { %s29_s9 = sadd.s32 1, %s3174_s23  ;;  %s32_s10 = sadd.s32 1, %s3178_s24 }
  0x2e   : > { %p30_p1 = scmp.ge.s32.totalorder %s29_s9, 2  ;;  %s41_s11 = sadd.s32 1, %s3162_s20 }
  0x2f   : > { %p48_p2 = scmp.ne.s32.totalorder %s3162_s20, %s3158_s19  ;;  %p49_p5 = scmp.eq.s32.totalorder %s3182_s25, 0 }
  0x30   : > { %s4593_s9 = smov (%p30_p1, %s29_s9), 0  ;;  %s4595_s10 = smov (!%p30_p1, %s32_s10), %s3178_s24 }
  0x31   : > { %4573 = sst [smem:[#allocation11_spill]] %s4593_s9  ;;  %s37_s12 = ssub.s32 %s3174_s23, %s4593_s9 }
  0x32   : > { %p3319_p6 = por %p49_p5, %p48_p2  ;;  %p34_p8 = scmp.ge.s32.totalorder %s4595_s10, 2 }
  0x33   : > { %p4575_p9 = scmp.ne.s32.totalorder %s4568_s28, 0  ;;  %p2947_p11 = scmp.lt.s32.totalorder %s3182_s25, 4 }
  0x34   : > { %s220_s13 = sand.u32 1, %s3162_s20   ;;  %s4597_s10 = smov (%p34_p8, %s4595_s10), 0 }
  0x35   : > { %p3325_p10 = por %p4575_p9, %p48_p2  ;;  %s2596_s14 = sshll.u32 %s220_s13, 7 }
  0x36   : > { %s36_s15 = ssub.s32 %s3178_s24, %s4597_s10  ;;  %s2597_s17 = sshll.u32 %s3174_s23, 4 }
  0x37   : > { %s38_s16 = sor.u32 %s37_s12, %s36_s15  ;;  %s2598_s18 = sshll.u32 %s3178_s24, 5 }
  0x38   : > { %p39_p12 = scmp.eq.s32.totalorder %s38_s16, 0  ;;  %s230_s26 = sadd.s32 %s2598_s18, %s2597_s17 }
  0x39   : > { %s224_s6 = scalar_lea.vmem [#allocation2], %s2596_s14  ;;  %s2599_s9 = sshll.u32 %s230_s26, 7 }
  0x3a   : > { %s233_s28 = sshll.u32 %s224_s6, 4  ;;  %s3345_s3 = scalar_lea.hbm %s4552_s0, %s2599_s9  ;;  %s3340_s28 = int_to_ptr.vmem [resolvable:$true] %s233_s28 }
  0x3b   : > { %s3338_s1 = scalar_select %p39_p12, %s3162_s20, %s41_s11  }
  0x3c   : > { %p3351_p13 = pnand %p2947_p11, %p3319_p6  ;;  %s3355_s11 = scalar_lea.sflag [#allocation3], %s220_s13 }
  0x3d   : > { %s3082_s14 = scalar_lea.hbm %s3345_s3, 2048  ;;  %s3087_s9 = scalar_lea.hbm %s4552_s0, 8192 }
  0x3e   : > { %p3083_p0 = scmp.ne.s32.totalorder %s3345_s3, %s3082_s14  ;;  %p3084_p3 = pneg %p3351_p13 }
  0x3f   : > { %p3088_p1 = scmp.lt.u32.totalorder %s3345_s3, %s4552_s0  ;;  %p3089_p2 = scmp.lt.u32.totalorder %s3087_s9, %s3082_s14 }
  0x40   : > { %p3085_p4 = pnand %p3084_p3, %p3083_p0  ;;  %p3091_p6 = scmp.lt.u32.totalorder %s3082_s14, %s3345_s3 }
  0x41   : > { %p3090_p5 = por %p3089_p2, %p3088_p1 }
  0x42   : > { %p3086_p7 = pneg %p3085_p4 }
  0x43   : > { %p3092_p8 = por %p3091_p6, %p3090_p5 }
  0x45   : > { %p3093_p9 = pnand %p3092_p8, %p3086_p7 }
  0x47   : > { %3096 = shalt.err (!%p3093_p9)
}
  0x48   : > { %s3097_s13 = scalar_lea.vmem %s3340_s28, 2048  ;;  %s3187_s16 = smov [#allocation2]  }
  0x49   : > { %p3098_p11 = scmp.ne.s32.totalorder %s3340_s28, %s3097_s13  ;;  %s3102_s17 = sshll.u32 %s3187_s16, 4  ;;  %s3103_s17 = int_to_ptr.vmem [resolvable:$false] %s3102_s17 }
  0x4a   : > { %s3104_s18 = scalar_lea.vmem %s3103_s17, 4096  ;;  %p3105_p4 = scmp.lt.s32.totalorder %s3340_s28, %s3103_s17 }
  0x4b   : > { %p3100_p12 = pnand %p3098_p11, %p3084_p3  ;;  %p3106_p1 = scmp.lt.s32.totalorder %s3104_s18, %s3097_s13 }
  0x4d   : > { %p3101_p0 = pneg %p3100_p12  ;;  %p3107_p2 = por %p3106_p1, %p3105_p4 }
  0x4f   : > { %p3108_p5 = pnand %p3107_p2, %p3101_p0 }
  0x51   : > { %3111 = shalt.err (!%p3108_p5)
}
  0x52   : > { %s3188_s26 = smov 128   ;;  %s3189_s6 = smov 8  }
  0x53   : > { %2945 = dma.hbm_to_vmem [thread:$0]  (!%p3351_p13), %s3345_s3, 2048, %s3340_s28, %s3355_s11, %s3188_s26, %s3188_s26, %s3189_s6  }
  0x54   : > { %p4578_p3 = scmp.ne.s32.totalorder %s4570_s30, 0 }
  0x55   : > { %s3386_s14 = sand.u32 (!%p4578_p3), 1, %s3158_s19   ;;  %p4579_p7 = scmp.ne.s32.totalorder (!%p4578_p3), %s4569_s29, 0 }
  0x56   : > { %245 = sbr.rel (%p4578_p3) target bundleno = 797 (0x31d), region = 32  ;;  %s2601_s4 = sshll.u32 (!%p4578_p3), %s3386_s14, 7 }
  0x57   : > { %s248_s5 = scalar_lea.sflag (!%p4578_p3), [#allocation3], %s3386_s14  ;;  %s3390_s9 = scalar_lea.vmem (!%p4578_p3), [#allocation2], %s2601_s4 }
  0x5d   : > { %3145 = dma.done.wait (%p4579_p7), %s248_s5, 2048  }
  0x5e   : > { %3147 = vsyncadd (%p4579_p7), %s248_s5, 4294965248  ;;  %p4580_p13 = scmp.ne.s32.totalorder %s4567_s27, 0 }
  0x60   : > { %3149 = dma.done.wait (%p4580_p13), [#allocation5], 3072  }
  0x61   : > { %3151 = vsyncadd (%p4580_p13), [#allocation5], 4294964224  ;;  %v3190_v0 = vmov 0   ;;  %v3022_v1 = vld [vmem:[#allocation4 + $0x4] ss:$12 sps:$4 sm:$0xff]   ;;  %v295_v19 = vld [vmem:[%s3390_s9 + $0x8] sm:$0xff]  ;;  %v352_v49 = vlaneseq }
  0x62   : > { %527 = vmatprep.mubr.bf16.mxu0 %v3190_v0  ;;  %v3024_v2 = vld [vmem:[#allocation4 + $0x8] ss:$12 sps:$4 sm:$0xff]   ;;  %495 = vmatprep.subr.bf16.mxu0 %v3022_v1  ;;  %v3025_v3 = vld [vmem:[#allocation4] ss:$12 sps:$4 sm:$0xff]   ;;  %v3029_v6 = vld [vmem:[#allocation4 + $0x18] ss:$12 sps:$4 sm:$0xff]  }
  0x63   : > { %2900 = vmatprep.subr.bf16.mxu1 %v3024_v2  ;;  %v3026_v4 = vld [vmem:[#allocation4 + $0x1c] ss:$12 sps:$4 sm:$0xff]   ;;  %496 = vmatpush1.bf16.msra.mxu0 %v3025_v3  ;;  %v3028_v5 = vld [vmem:[#allocation4 + $0x20] ss:$12 sps:$4 sm:$0xff]   ;;  %v3032_v8 = vld [vmem:[#allocation4 + $0x38] ss:$12 sps:$4 sm:$0xff]  }
  0x64   : > { %2901 = vmatpush3.bf16.msra.mxu1 %v3024_v2  ;;  %497 = vmatprep.subr.bf16.mxu0 %v3026_v4  ;;  %v3030_v7 = vld [vmem:[#allocation4 + $0x34] ss:$12 sps:$4 sm:$0xff]   ;;  %v3033_v9 = vld [vmem:[#allocation4 + $0x30] ss:$12 sps:$4 sm:$0xff]   ;;  %v3034_v10 = vld [vmem:[#allocation4 + $0x4c] ss:$12 sps:$4 sm:$0xff]  }
  0x65   : > { %2902 = vmatprep.subr.bf16.mxu1 %v3028_v5  ;;  %v3036_v11 = vld [vmem:[#allocation4 + $0x50] ss:$12 sps:$4 sm:$0xff]   ;;  %v3037_v12 = vld [vmem:[#allocation4 + $0x48] ss:$12 sps:$4 sm:$0xff]   ;;  %v3041_v15 = vld [vmem:[#allocation4 + $0x60] ss:$12 sps:$4 sm:$0xff]  }
  0x66   : > { %v3038_v13 = vld [vmem:[#allocation4 + $0x64] ss:$12 sps:$4 sm:$0xff]   ;;  %v3040_v14 = vld [vmem:[#allocation4 + $0x68] ss:$12 sps:$4 sm:$0xff]   ;;  %v3044_v17 = vld [vmem:[#allocation4 + $0x80] ss:$12 sps:$4 sm:$0xff]  }
  0x67   : > { %498 = vmatpush1.bf16.msra.mxu0 %v3029_v6  ;;  %v3042_v16 = vld [vmem:[#allocation4 + $0x7c] ss:$12 sps:$4 sm:$0xff]   ;;  %v294_v18 = vld [vmem:[%s3390_s9] sm:$0xff]  ;;  %v3050_v25 = vld [vmem:[#allocation4 + $0xac] ss:$12 sps:$4 sm:$0xff]   ;;  %v353_v50 = vshrl.u32 %v352_v49, 7 }
  0x68   : > { %2903 = vmatpush3.bf16.msra.mxu1 %v3028_v5  ;;  %499 = vmatprep.subr.bf16.mxu0 %v3030_v7  ;;  %v3045_v20 = vld [vmem:[#allocation4 + $0x78] ss:$12 sps:$4 sm:$0xff]   ;;  %v310_v21 = vpack.c.bf16 %v295_v19, %v294_v18  ;;  %v3046_v22 = vld [vmem:[#allocation4 + $0x94] ss:$12 sps:$4 sm:$0xff]   ;;  %v3049_v24 = vld [vmem:[#allocation4 + $0x90] ss:$12 sps:$4 sm:$0xff]  }
  0x69   : > { %2904 = vmatprep.subr.bf16.mxu1 %v3032_v8  ;;  %v3048_v23 = vld [vmem:[#allocation4 + $0x98] ss:$12 sps:$4 sm:$0xff]   ;;  %v3052_v26 = vld [vmem:[#allocation4 + $0xb0] ss:$12 sps:$4 sm:$0xff]   ;;  %v3053_v27 = vld [vmem:[#allocation4 + $0xa8] ss:$12 sps:$4 sm:$0xff]  }
  0x6a   : > { %2916 = vmatprep.mubr.bf16.mxu1 %v310_v21  ;;  %v296_v28 = vld [vmem:[%s3390_s9 + $0x10] sm:$0xff]  ;;  %v297_v29 = vld [vmem:[%s3390_s9 + $0x18] sm:$0xff]  ;;  %v298_v30 = vld [vmem:[%s3390_s9 + $0x20] sm:$0xff]  ;;  %v354_v51 = vsub.s32 0, %v353_v50  ;;  %v362_v52 = vsub.s32 2, %v353_v50  ;;  %v358_v54 = vsub.s32 1, %v353_v50 }
  0x6b   : > { %500 = vmatpush1.bf16.msra.mxu0 %v3033_v9  ;;  %v299_v31 = vld [vmem:[%s3390_s9 + $0x28] sm:$0xff]  ;;  %v311_v32 = vpack.c.bf16 %v297_v29, %v296_v28  ;;  %v300_v34 = vld [vmem:[%s3390_s9 + $0x30] sm:$0xff]  ;;  %v301_v35 = vld [vmem:[%s3390_s9 + $0x38] sm:$0xff]  ;;  %s3434_s29 = sshll.u32 %s3386_s14, 8  ;;  %vm769_vm0 = vcmask 257024   ;;  %s3191_s12 = smov 96  }
  0x6c   : > { %2905 = vmatpush3.bf16.msra.mxu1 %v3032_v8  ;;  %501 = vmatprep.subr.bf16.mxu0 %v3034_v10  ;;  %v312_v33 = vpack.c.bf16 %v299_v31, %v298_v30  ;;  %v302_v36 = vld [vmem:[%s3390_s9 + $0x40] sm:$0xff]  ;;  %v303_v37 = vld [vmem:[%s3390_s9 + $0x48] sm:$0xff]  ;;  %v313_v38 = vpack.c.bf16 %v301_v35, %v300_v34  ;;  %v304_v40 = vld [vmem:[%s3390_s9 + $0x50] sm:$0xff]  ;;  %s3453_s30 = scalar_lea.vmem [#allocation6], %s3434_s29  ;;  %s3459_s28 = scalar_lea.vmem [#allocation8], %s3434_s29 }
  0x6d   : > { %2906 = vmatprep.subr.bf16.mxu1 %v3036_v11  ;;  %v314_v39 = vpack.c.bf16 %v303_v37, %v302_v36  ;;  %v305_v41 = vld [vmem:[%s3390_s9 + $0x58] sm:$0xff]  ;;  %v306_v42 = vld [vmem:[%s3390_s9 + $0x60] sm:$0xff]  ;;  %v307_v43 = vld [vmem:[%s3390_s9 + $0x68] sm:$0xff]  ;;  %s3471_s11 = scalar_lea.vmem [#allocation7], %s3434_s29  ;;  %s3192_s8 = smov 64  }
  0x6e   : > { %v315_v44 = vpack.c.bf16 %v305_v41, %v304_v40  ;;  %v316_v45 = vpack.c.bf16 %v307_v43, %v306_v42  ;;  %v308_v46 = vld [vmem:[%s3390_s9 + $0x70] sm:$0xff]  ;;  %v309_v47 = vld [vmem:[%s3390_s9 + $0x78] sm:$0xff]  ;;  %v350_v53 = vld [vmem:[%s4554_s2] sm:$0x7]  ;;  %s3193_s15 = smov 32   ;;  %s2825_s13 = sshll.u32 (%p3325_p10), %s3166_s21, 4 }
  0x6f   : > { %502 = vmatpush1.bf16.msra.mxu0 %v3037_v12  ;;  %v317_v48 = vpack.c.bf16 %v309_v47, %v308_v46  ;;  %v3427_v55 = vrot.slane %v350_v53, %v354_v51  ;;  %v3429_v56 = vrot.slane %v350_v53, %v362_v52  ;;  %v3431_v57 = vrot.slane %v350_v53, %v358_v54  ;;  %s2826_s16 = sshll.u32 (%p3325_p10), %s3170_s22, 7  ;;  %s4581_s14 = sld [smem:[#allocation13_spill]] (%p3325_p10) }
  0x70   : > { %2907 = vmatpush3.bf16.msra.mxu1 %v3036_v11  ;;  %503 = vmatprep.subr.bf16.mxu0 %v3038_v13  ;;  %s1548_s17 = sadd.s32 (%p3325_p10), %s2826_s16, %s2825_s13 }
  0x71   : > { %2908 = vmatprep.subr.bf16.mxu1 %v3040_v14  ;;  %s2827_s18 = sshll.u32 (%p3325_p10), %s1548_s17, 2 }
  0x73   : > { %504 = vmatpush1.bf16.msra.mxu0 %v3041_v15 }
  0x74   : > { %2909 = vmatpush3.bf16.msra.mxu1 %v3040_v14  ;;  %505 = vmatprep.subr.bf16.mxu0 %v3042_v16 }
  0x75   : > { %2910 = vmatprep.subr.bf16.mxu1 %v3044_v17  ;;  %s4325_s4 = scalar_lea.vmem (%p3325_p10), %s4581_s14, %s2827_s18 }
  0x77   : > { %506 = vmatpush1.bf16.msra.mxu0 %v3045_v20 }
  0x78   : > { %2911 = vmatpush3.bf16.msra.mxu1 %v3044_v17  ;;  %507 = vmatprep.subr.bf16.mxu0 %v3046_v22 }
  0x79   : > { %2912 = vmatprep.subr.bf16.mxu1 %v3048_v23 }
  0x7b   : > { %508 = vmatpush1.bf16.msra.mxu0 %v3049_v24 }
  0x7c   : > { %2913 = vmatpush3.bf16.msra.mxu1 %v3048_v23  ;;  %509 = vmatprep.subr.bf16.mxu0 %v3050_v25 }
  0x7d   : > { %2914 = vmatprep.subr.bf16.mxu1 %v3052_v26 }
  0x7f   : > { %510 = vmatpush1.bf16.msra.mxu0 %v3053_v27 }
  0x80   : > { %2915 = vmatpush3.bf16.msra.mxu1 %v3052_v26 }
  0x82   : > { %528 = vmatmul.mubr.bf16.vlgmr.msra.gmra.mrb[0].mxu0 %v310_v21 }
  0x83   : > { %2917 = vmatmul.mubr.bf16.vlgmr.msra.gmra.mrb[0].mxu1 %v311_v32  ;;  %537 = vmatprep.mubr.bf16.mxu0 %v3190_v0 }
  0x84   : > { %2920 = vmatprep.mubr.bf16.mxu1 %v312_v33 }
  0x8a   : > { %538 = vmatmul.mubr.bf16.gmra.mrb[4].mxu0 %v311_v32 }
  0x8b   : > { %2921 = vmatmul.mubr.bf16.gmra.mrb[4].mxu1 %v313_v38  ;;  %547 = vmatprep.mubr.bf16.mxu0 %v3190_v0 }
  0x8c   : > { %2924 = vmatprep.mubr.bf16.mxu1 %v314_v39 }
  0x92   : > { %548 = vmatmul.mubr.bf16.gmra.mrb[8].mxu0 %v312_v33 }
  0x93   : > { %2925 = vmatmul.mubr.bf16.gmra.mrb[8].mxu1 %v315_v44  ;;  %557 = vmatprep.mubr.bf16.mxu0 %v3190_v0 }
  0x94   : > { %2928 = vmatprep.mubr.bf16.mxu1 %v316_v45 }
  0x9a   : > { %558 = vmatmul.mubr.bf16.gmra.mrb[12].mxu0 %v313_v38 }
  0x9b   : > { %2929 = vmatmul.mubr.bf16.gmra.mrb[12].mxu1 %v317_v48  ;;  %567 = vmatprep.mubr.bf16.mxu0 %v3190_v0 }
  0xa2   : > { %568 = vmatmul.mubr.bf16.gmra.mrb[16].mxu0 %v314_v39 }
  0xa3   : > { %577 = vmatprep.mubr.bf16.mxu0 %v3190_v0 }
  0xaa   : > { %578 = vmatmul.mubr.bf16.gmra.mrb[20].mxu0 %v315_v44 }
  0xab   : > { %587 = vmatprep.mubr.bf16.mxu0 %v3190_v0 }
  0xb2   : > { %588 = vmatmul.mubr.bf16.gmra.mrb[24].mxu0 %v316_v45 }
  0xb3   : > { %597 = vmatprep.mubr.bf16.mxu0 %v3190_v0 }
  0xba   : > { %598 = vmatmul.mubr.bf16.gmra.mrb[28].mxu0 %v317_v48 }
 0x155   : > { %v529_v58 = vpop.f32.mrb[0].mxu0 }
 0x156   : > { %v2918_v59 = vpop.f32.mrb[0].mxu1  ;;  %v530_v60 = vadd.f32 %v529_v58, %v3427_v55  ;;  %v531_v62 = vpop.f32.mrb[1].mxu0 }
 0x157   : > { %v651_v61 = vadd.f32 %v2918_v59, %v3429_v56  ;;  %v642_v63 = vpop.f32.mrb[1].mxu1  ;;  %v532_v0 = vadd.f32 %v531_v62, %v3431_v57  ;;  %v533_v2 = vpop.f32.mrb[2].mxu0 }
 0x158   : > { %v643_v1 = vadd.f32 %v642_v63, %v3429_v56  ;;  %v2919_v3 = vpop.f32.mrb[2].mxu1  ;;  %v3440_v4 = vpack.c.bf16 %v530_v60, %v530_v60  ;;  %v534_v6 = vadd.f32 %v533_v2, %v3427_v55  ;;  %v535_v8 = vpop.f32.mrb[3].mxu0 }
 0x159   : > { %v3442_v5 = vpack.c.bf16 %v651_v61, %v651_v61  ;;  %v654_v7 = vadd.f32 %v2919_v3, %v3429_v56  ;;  %v645_v9 = vpop.f32.mrb[3].mxu1  ;;  %v3446_v10 = vpack.c.bf16 %v532_v0, %v532_v0  ;;  %v536_v12 = vadd.f32 %v535_v8, %v3431_v57 }
 0x15a   : > { %v3448_v11 = vpack.c.bf16 %v643_v1, %v643_v1  ;;  %v646_v13 = vadd.f32 %v645_v9, %v3429_v56  ;;  %770 = vst.msk [vmem:[%s3453_s30] sm:$0xf] %vm769_vm0, %v3440_v4  ;;  %v3464_v14 = vpack.c.bf16 %v534_v6, %v534_v6  ;;  %946 = vrot.lane.b32.xlu0 %v3440_v4, %s3191_s12 }
 0x15b   : > { %932 = vst.msk [vmem:[%s3459_s28 + $0x8] sm:$0xf] %vm769_vm0, %v3442_v5  ;;  %v3466_v15 = vpack.c.bf16 %v654_v7, %v654_v7  ;;  %850 = vst.msk [vmem:[%s3471_s11] sm:$0xf] %vm769_vm0, %v3446_v10  ;;  %v3479_v16 = vpack.c.bf16 %v536_v12, %v536_v12 }
 0x15c   : > { %930 = vst.msk [vmem:[%s3459_s28] sm:$0xf] %vm769_vm0, %v3448_v11  ;;  %v3481_v17 = vpack.c.bf16 %v646_v13, %v646_v13  ;;  %771 = vst.msk [vmem:[%s3453_s30 + $0x4] sm:$0xf] %vm769_vm0, %v3464_v14 }
 0x15d   : > { %933 = vst.msk [vmem:[%s3459_s28 + $0xc] sm:$0xf] %vm769_vm0, %v3466_v15  ;;  %1082 = vrot.lane.b32.xlu1 %v3466_v15, %s3191_s12  ;;  %851 = vst.msk [vmem:[%s3471_s11 + $0x4] sm:$0xf] %vm769_vm0, %v3479_v16  ;;  %v539_v18 = vpop.f32.mrb[4].mxu0 }
 0x15e   : > { %931 = vst.msk [vmem:[%s3459_s28 + $0x4] sm:$0xf] %vm769_vm0, %v3481_v17  ;;  %v2922_v19 = vpop.f32.mrb[4].mxu1  ;;  %1080 = vrot.lane.b32.xlu0 %v3442_v5, %s3191_s12  ;;  %v540_v20 = vadd.f32 %v539_v18, %v3427_v55  ;;  %v541_v21 = vpop.f32.mrb[5].mxu0 }
 0x15f   : > { %v667_v22 = vadd.f32 %v2922_v19, %v3429_v56  ;;  %v658_v23 = vpop.f32.mrb[5].mxu1  ;;  %v542_v24 = vadd.f32 %v541_v21, %v3431_v57  ;;  %v543_v25 = vpop.f32.mrb[6].mxu0 }
 0x160   : > { %v659_v26 = vadd.f32 %v658_v23, %v3429_v56  ;;  %v2923_v27 = vpop.f32.mrb[6].mxu1  ;;  %v3505_v28 = vpack.c.bf16 %v540_v20, %v540_v20  ;;  %v544_v29 = vadd.f32 %v543_v25, %v3427_v55  ;;  %v545_v30 = vpop.f32.mrb[7].mxu0 }
 0x161   : > { %1143 = vrot.lane.b32.xlu1 %v3464_v14, %s3192_s8  ;;  %v3508_v31 = vpack.c.bf16 %v667_v22, %v667_v22  ;;  %v670_v32 = vadd.f32 %v2923_v27, %v3429_v56  ;;  %v661_v33 = vpop.f32.mrb[7].mxu1  ;;  %v3511_v34 = vpack.c.bf16 %v542_v24, %v542_v24  ;;  %v546_v35 = vadd.f32 %v545_v30, %v3431_v57 }
 0x162   : > { %v3514_v36 = vpack.c.bf16 %v659_v26, %v659_v26  ;;  %v662_v37 = vadd.f32 %v661_v33, %v3429_v56  ;;  %1141 = vrot.lane.b32.xlu0 %v3440_v4, %s3192_s8  ;;  %772 = vst.msk [vmem:[%s3453_s30 + $0x8] sm:$0xf] %vm769_vm0, %v3505_v28  ;;  %v3522_v38 = vpack.c.bf16 %v544_v29, %v544_v29 }
 0x163   : > { %936 = vst.msk [vmem:[%s3459_s28 + $0x18] sm:$0xf] %vm769_vm0, %v3508_v31  ;;  %v3527_v39 = vpack.c.bf16 %v670_v32, %v670_v32  ;;  %852 = vst.msk [vmem:[%s3471_s11 + $0x8] sm:$0xf] %vm769_vm0, %v3511_v34  ;;  %v3532_v40 = vpack.c.bf16 %v546_v35, %v546_v35 }
 0x164   : > { %934 = vst.msk [vmem:[%s3459_s28 + $0x10] sm:$0xf] %vm769_vm0, %v3514_v36  ;;  %v3537_v41 = vpack.c.bf16 %v662_v37, %v662_v37  ;;  %773 = vst.msk [vmem:[%s3453_s30 + $0xc] sm:$0xf] %vm769_vm0, %v3522_v38 }
 0x165   : > { %1277 = vrot.lane.b32.xlu1 %v3466_v15, %s3192_s8  ;;  %937 = vst.msk [vmem:[%s3459_s28 + $0x1c] sm:$0xf] %vm769_vm0, %v3527_v39  ;;  %853 = vst.msk [vmem:[%s3471_s11 + $0xc] sm:$0xf] %vm769_vm0, %v3532_v40  ;;  %v549_v42 = vpop.f32.mrb[8].mxu0 }
 0x166   : > { %935 = vst.msk [vmem:[%s3459_s28 + $0x14] sm:$0xf] %vm769_vm0, %v3537_v41  ;;  %v2926_v43 = vpop.f32.mrb[8].mxu1  ;;  %1275 = vrot.lane.b32.xlu0 %v3442_v5, %s3192_s8  ;;  %v550_v44 = vadd.f32 %v549_v42, %v3427_v55  ;;  %v551_v45 = vpop.f32.mrb[9].mxu0 }
 0x167   : > { %v683_v46 = vadd.f32 %v2926_v43, %v3429_v56  ;;  %v674_v47 = vpop.f32.mrb[9].mxu1  ;;  %v552_v48 = vadd.f32 %v551_v45, %v3431_v57  ;;  %v553_v49 = vpop.f32.mrb[10].mxu0 }
 0x168   : > { %v675_v50 = vadd.f32 %v674_v47, %v3429_v56  ;;  %v2927_v51 = vpop.f32.mrb[10].mxu1  ;;  %v3561_v52 = vpack.c.bf16 %v550_v44, %v550_v44  ;;  %v554_v53 = vadd.f32 %v553_v49, %v3427_v55  ;;  %v555_v54 = vpop.f32.mrb[11].mxu0 }
 0x169   : > { %1338 = vrot.lane.b32.xlu1 %v3464_v14, %s3193_s15  ;;  %v3564_v58 = vpack.c.bf16 %v683_v46, %v683_v46  ;;  %v686_v59 = vadd.f32 %v2927_v51, %v3429_v56  ;;  %v677_v60 = vpop.f32.mrb[11].mxu1  ;;  %v3567_v61 = vpack.c.bf16 %v552_v48, %v552_v48  ;;  %v556_v62 = vadd.f32 %v555_v54, %v3431_v57 }
 0x16a   : > { %v3570_v63 = vpack.c.bf16 %v675_v50, %v675_v50  ;;  %v678_v0 = vadd.f32 %v677_v60, %v3429_v56  ;;  %1336 = vrot.lane.b32.xlu0 %v3440_v4, %s3193_s15  ;;  %774 = vst.msk [vmem:[%s3453_s30 + $0x10] sm:$0xf] %vm769_vm0, %v3561_v52  ;;  %v3578_v1 = vpack.c.bf16 %v554_v53, %v554_v53 }
 0x16b   : > { %940 = vst.msk [vmem:[%s3459_s28 + $0x28] sm:$0xf] %vm769_vm0, %v3564_v58  ;;  %v3583_v2 = vpack.c.bf16 %v686_v59, %v686_v59  ;;  %854 = vst.msk [vmem:[%s3471_s11 + $0x10] sm:$0xf] %vm769_vm0, %v3567_v61  ;;  %v3588_v3 = vpack.c.bf16 %v556_v62, %v556_v62 }
 0x16c   : > { %938 = vst.msk [vmem:[%s3459_s28 + $0x20] sm:$0xf] %vm769_vm0, %v3570_v63  ;;  %v3593_v6 = vpack.c.bf16 %v678_v0, %v678_v0  ;;  %775 = vst.msk [vmem:[%s3453_s30 + $0x14] sm:$0xf] %vm769_vm0, %v3578_v1 }
 0x16d   : > { %1472 = vrot.lane.b32.xlu1 %v3466_v15, %s3193_s15  ;;  %941 = vst.msk [vmem:[%s3459_s28 + $0x2c] sm:$0xf] %vm769_vm0, %v3583_v2  ;;  %855 = vst.msk [vmem:[%s3471_s11 + $0x14] sm:$0xf] %vm769_vm0, %v3588_v3  ;;  %v559_v4 = vpop.f32.mrb[12].mxu0 }
 0x16e   : > { %939 = vst.msk [vmem:[%s3459_s28 + $0x24] sm:$0xf] %vm769_vm0, %v3593_v6  ;;  %v2930_v7 = vpop.f32.mrb[12].mxu1  ;;  %1470 = vrot.lane.b32.xlu0 %v3442_v5, %s3193_s15  ;;  %v560_v8 = vadd.f32 %v559_v4, %v3427_v55  ;;  %v561_v9 = vpop.f32.mrb[13].mxu0 }
 0x16f   : > { %v699_v12 = vadd.f32 %v2930_v7, %v3429_v56  ;;  %v690_v13 = vpop.f32.mrb[13].mxu1  ;;  %v562_v15 = vadd.f32 %v561_v9, %v3431_v57  ;;  %v563_v18 = vpop.f32.mrb[14].mxu0 }
 0x170   : > { %v691_v19 = vadd.f32 %v690_v13, %v3429_v56  ;;  %v2931_v20 = vpop.f32.mrb[14].mxu1  ;;  %v3617_v21 = vpack.c.bf16 %v560_v8, %v560_v8  ;;  %v564_v5 = vadd.f32 %v563_v18, %v3427_v55  ;;  %v565_v22 = vpop.f32.mrb[15].mxu0 }
 0x171   : > { %1013 = vrot.lane.b32.xlu1 %v3479_v16, %s3191_s12  ;;  %v3620_v23 = vpack.c.bf16 %v699_v12, %v699_v12  ;;  %v702_v24 = vadd.f32 %v2931_v20, %v3429_v56  ;;  %v693_v25 = vpop.f32.mrb[15].mxu1  ;;  %v3623_v26 = vpack.c.bf16 %v562_v15, %v562_v15  ;;  %v566_v27 = vadd.f32 %v565_v22, %v3431_v57 }
 0x172   : > { %v3626_v29 = vpack.c.bf16 %v691_v19, %v691_v19  ;;  %v694_v30 = vadd.f32 %v693_v25, %v3429_v56  ;;  %1011 = vrot.lane.b32.xlu0 %v3446_v10, %s3191_s12  ;;  %776 = vst.msk [vmem:[%s3453_s30 + $0x18] sm:$0xf] %vm769_vm0, %v3617_v21  ;;  %v3634_v32 = vpack.c.bf16 %v564_v5, %v564_v5 }
 0x173   : > { %944 = vst.msk [vmem:[%s3459_s28 + $0x38] sm:$0xf] %vm769_vm0, %v3620_v23  ;;  %v3639_v33 = vpack.c.bf16 %v702_v24, %v702_v24  ;;  %856 = vst.msk [vmem:[%s3471_s11 + $0x18] sm:$0xf] %vm769_vm0, %v3623_v26  ;;  %v3644_v35 = vpack.c.bf16 %v566_v27, %v566_v27 }
 0x174   : > { %942 = vst.msk [vmem:[%s3459_s28 + $0x30] sm:$0xf] %vm769_vm0, %v3626_v29  ;;  %v3649_v56 = vpack.c.bf16 %v694_v30, %v694_v30  ;;  %777 = vst.msk [vmem:[%s3453_s30 + $0x1c] sm:$0xf] %vm769_vm0, %v3634_v32 }
 0x175   : > { %1078 = vrot.lane.b32.xlu1 %v3481_v17, %s3191_s12  ;;  %945 = vst.msk [vmem:[%s3459_s28 + $0x3c] sm:$0xf] %vm769_vm0, %v3639_v33  ;;  %857 = vst.msk [vmem:[%s3471_s11 + $0x1c] sm:$0xf] %vm769_vm0, %v3644_v35 }
 0x176   : > { %943 = vst.msk [vmem:[%s3459_s28 + $0x34] sm:$0xf] %vm769_vm0, %v3649_v56  ;;  %1076 = vrot.lane.b32.xlu0 %v3448_v11, %s3191_s12 }
 0x179   : > { %1208 = vrot.lane.b32.xlu1 %v3479_v16, %s3192_s8 }
 0x17a   : > { %1206 = vrot.lane.b32.xlu0 %v3446_v10, %s3192_s8 }
 0x17d   : > { %1273 = vrot.lane.b32.xlu1 %v3481_v17, %s3192_s8 }
 0x17e   : > { %1271 = vrot.lane.b32.xlu0 %v3448_v11, %s3192_s8 }
 0x181   : > { %1403 = vrot.lane.b32.xlu1 %v3479_v16, %s3193_s15  ;;  %v569_v16 = vpop.f32.mrb[16].mxu0 }
 0x182   : > { %1401 = vrot.lane.b32.xlu0 %v3446_v10, %s3193_s15  ;;  %v570_v10 = vadd.f32 %v569_v16, %v3427_v55 }
 0x185   : > { %1468 = vrot.lane.b32.xlu1 %v3481_v17, %s3193_s15  ;;  %v571_v17 = vpop.f32.mrb[17].mxu0 }
 0x186   : > { %1466 = vrot.lane.b32.xlu0 %v3448_v11, %s3193_s15  ;;  %v3694_v11 = vpack.c.bf16 %v570_v10, %v570_v10  ;;  %v573_v37 = vpop.f32.mrb[18].mxu0 }
 0x187   : > { %v574_v42 = vadd.f32 %v573_v37, %v3427_v55  ;;  %v575_v43 = vpop.f32.mrb[19].mxu0 }
 0x188   : > { %778 = vst.msk [vmem:[%s3453_s30 + $0x20] sm:$0xf] %vm769_vm0, %v3694_v11  ;;  %v576_v45 = vadd.f32 %v575_v43, %v3431_v57  ;;  %v579_v48 = vpop.f32.mrb[20].mxu0 }
 0x189   : > { %950 = vrot.lane.b32.xlu1 %v3505_v28, %s3191_s12  ;;  %v3706_v46 = vpack.c.bf16 %v574_v42, %v574_v42 }
 0x18a   : > { %948 = vrot.lane.b32.xlu0 %v3464_v14, %s3191_s12  ;;  %v572_v14 = vadd.f32 %v571_v17, %v3431_v57  ;;  %v3713_v47 = vpack.c.bf16 %v576_v45, %v576_v45 }
 0x18b   : > { %779 = vst.msk [vmem:[%s3453_s30 + $0x24] sm:$0xf] %vm769_vm0, %v3706_v46 }
 0x18c   : > { %v3703_v44 = vpack.c.bf16 %v572_v14, %v572_v14  ;;  %859 = vst.msk [vmem:[%s3471_s11 + $0x24] sm:$0xf] %vm769_vm0, %v3713_v47 }
 0x18d   : > { %952 = vrot.lane.b32.xlu1 %v3522_v38, %s3191_s12 }
 0x18e   : > { %1088 = vrot.lane.b32.xlu0 %v3508_v31, %s3191_s12  ;;  %858 = vst.msk [vmem:[%s3471_s11 + $0x20] sm:$0xf] %vm769_vm0, %v3703_v44 }
 0x191   : > { %1090 = vrot.lane.b32.xlu1 %v3527_v39, %s3191_s12 }
 0x192   : > { %1145 = vrot.lane.b32.xlu0 %v3505_v28, %s3192_s8 }
 0x195   : > { %1147 = vrot.lane.b32.xlu1 %v3522_v38, %s3192_s8 }
 0x196   : > { %1283 = vrot.lane.b32.xlu0 %v3508_v31, %s3192_s8 }
 0x199   : > { %1285 = vrot.lane.b32.xlu1 %v3527_v39, %s3192_s8 }
 0x19a   : > { %1340 = vrot.lane.b32.xlu0 %v3505_v28, %s3193_s15  ;;  %v580_v28 = vadd.f32 %v579_v48, %v3427_v55 }
 0x19d   : > { %1342 = vrot.lane.b32.xlu1 %v3522_v38, %s3193_s15  ;;  %v581_v38 = vpop.f32.mrb[21].mxu0 }
 0x19e   : > { %1478 = vrot.lane.b32.xlu0 %v3508_v31, %s3193_s15  ;;  %v3742_v31 = vpack.c.bf16 %v580_v28, %v580_v28  ;;  %v583_v49 = vpop.f32.mrb[22].mxu0 }
 0x19f   : > { %v584_v50 = vadd.f32 %v583_v49, %v3427_v55  ;;  %v585_v51 = vpop.f32.mrb[23].mxu0 }
 0x1a0   : > { %780 = vst.msk [vmem:[%s3453_s30 + $0x28] sm:$0xf] %vm769_vm0, %v3742_v31  ;;  %v586_v54 = vadd.f32 %v585_v51, %v3431_v57  ;;  %v589_v62 = vpop.f32.mrb[24].mxu0 }
 0x1a1   : > { %1480 = vrot.lane.b32.xlu1 %v3527_v39, %s3193_s15  ;;  %v582_v39 = vadd.f32 %v581_v38, %v3431_v57  ;;  %v3754_v59 = vpack.c.bf16 %v584_v50, %v584_v50 }
 0x1a2   : > { %1015 = vrot.lane.b32.xlu0 %v3511_v34, %s3191_s12  ;;  %v3761_v60 = vpack.c.bf16 %v586_v54, %v586_v54 }
 0x1a3   : > { %v3751_v53 = vpack.c.bf16 %v582_v39, %v582_v39  ;;  %781 = vst.msk [vmem:[%s3453_s30 + $0x2c] sm:$0xf] %vm769_vm0, %v3754_v59 }
 0x1a4   : > { %861 = vst.msk [vmem:[%s3471_s11 + $0x2c] sm:$0xf] %vm769_vm0, %v3761_v60 }
 0x1a5   : > { %1017 = vrot.lane.b32.xlu1 %v3532_v40, %s3191_s12  ;;  %860 = vst.msk [vmem:[%s3471_s11 + $0x28] sm:$0xf] %vm769_vm0, %v3751_v53 }
 0x1a6   : > { %1084 = vrot.lane.b32.xlu0 %v3514_v36, %s3191_s12 }
 0x1a9   : > { %1086 = vrot.lane.b32.xlu1 %v3537_v41, %s3191_s12 }
 0x1aa   : > { %1210 = vrot.lane.b32.xlu0 %v3511_v34, %s3192_s8 }
 0x1ad   : > { %1212 = vrot.lane.b32.xlu1 %v3532_v40, %s3192_s8 }
 0x1ae   : > { %1279 = vrot.lane.b32.xlu0 %v3514_v36, %s3192_s8 }
 0x1b1   : > { %1281 = vrot.lane.b32.xlu1 %v3537_v41, %s3192_s8 }
 0x1b2   : > { %1405 = vrot.lane.b32.xlu0 %v3511_v34, %s3193_s15  ;;  %v590_v34 = vadd.f32 %v589_v62, %v3427_v55 }
 0x1b5   : > { %1407 = vrot.lane.b32.xlu1 %v3532_v40, %s3193_s15  ;;  %v591_v40 = vpop.f32.mrb[25].mxu0 }
 0x1b6   : > { %1474 = vrot.lane.b32.xlu0 %v3514_v36, %s3193_s15  ;;  %v3790_v36 = vpack.c.bf16 %v590_v34, %v590_v34  ;;  %v593_v0 = vpop.f32.mrb[26].mxu0 }
 0x1b7   : > { %v594_v4 = vadd.f32 %v593_v0, %v3427_v55  ;;  %v595_v7 = vpop.f32.mrb[27].mxu0 }
 0x1b8   : > { %782 = vst.msk [vmem:[%s3453_s30 + $0x30] sm:$0xf] %vm769_vm0, %v3790_v36  ;;  %v596_v9 = vadd.f32 %v595_v7, %v3431_v57 }
 0x1b9   : > { %1476 = vrot.lane.b32.xlu1 %v3537_v41, %s3193_s15  ;;  %v592_v41 = vadd.f32 %v591_v40, %v3431_v57  ;;  %v3802_v12 = vpack.c.bf16 %v594_v4, %v594_v4 }
 0x1ba   : > { %954 = vrot.lane.b32.xlu0 %v3561_v52, %s3191_s12  ;;  %v3809_v13 = vpack.c.bf16 %v596_v9, %v596_v9 }
 0x1bb   : > { %v3799_v8 = vpack.c.bf16 %v592_v41, %v592_v41  ;;  %783 = vst.msk [vmem:[%s3453_s30 + $0x34] sm:$0xf] %vm769_vm0, %v3802_v12 }
 0x1bc   : > { %863 = vst.msk [vmem:[%s3471_s11 + $0x34] sm:$0xf] %vm769_vm0, %v3809_v13 }
 0x1bd   : > { %956 = vrot.lane.b32.xlu1 %v3578_v1, %s3191_s12  ;;  %862 = vst.msk [vmem:[%s3471_s11 + $0x30] sm:$0xf] %vm769_vm0, %v3799_v8 }
 0x1be   : > { %1096 = vrot.lane.b32.xlu0 %v3564_v58, %s3191_s12 }
 0x1c1   : > { %1098 = vrot.lane.b32.xlu1 %v3583_v2, %s3191_s12 }
 0x1c2   : > { %1149 = vrot.lane.b32.xlu0 %v3561_v52, %s3192_s8 }
 0x1c5   : > { %1151 = vrot.lane.b32.xlu1 %v3578_v1, %s3192_s8 }
 0x1c6   : > { %1291 = vrot.lane.b32.xlu0 %v3564_v58, %s3192_s8 }
 0x1c9   : > { %1293 = vrot.lane.b32.xlu1 %v3583_v2, %s3192_s8 }
 0x1ca   : > { %1344 = vrot.lane.b32.xlu0 %v3561_v52, %s3193_s15 }
 0x1cc   : > { %v947_v15 = vpop.permute.xlu0 %946 }
 0x1cd   : > { %1346 = vrot.lane.b32.xlu1 %v3578_v1, %s3193_s15  ;;  %2678 = vst.msk [vmem:[%s3453_s30 + $0x40] sm:$0xf] %vm769_vm0, %v947_v15 }
 0x1ce   : > { %1486 = vrot.lane.b32.xlu0 %v3564_v58, %s3193_s15  ;;  %v599_v58 = vpop.f32.mrb[28].mxu0 }
 0x1cf   : > { %v1083_v18 = vpop.permute.xlu1 %1082  ;;  %v601_v5 = vpop.f32.mrb[29].mxu0 }
 0x1d0   : > { %2713 = vst.msk [vmem:[%s3459_s28 + $0x4c] sm:$0xf] %vm769_vm0, %v1083_v18  ;;  %v1081_v19 = vpop.permute.xlu0 %1080  ;;  %v602_v25 = vadd.f32 %v601_v5, %v3431_v57  ;;  %v603_v27 = vpop.f32.mrb[30].mxu0 }
 0x1d1   : > { %1488 = vrot.lane.b32.xlu1 %v3583_v2, %s3193_s15  ;;  %2712 = vst.msk [vmem:[%s3459_s28 + $0x48] sm:$0xf] %vm769_vm0, %v1081_v19  ;;  %v600_v2 = vadd.f32 %v599_v58, %v3427_v55  ;;  %v604_v30 = vadd.f32 %v603_v27, %v3427_v55  ;;  %v605_v16 = vpop.f32.mrb[31].mxu0 }
 0x1d2   : > { %1019 = vrot.lane.b32.xlu0 %v3567_v61, %s3191_s12  ;;  %v3861_v17 = vpack.c.bf16 %v602_v25, %v602_v25  ;;  %v606_v14 = vadd.f32 %v605_v16, %v3431_v57 }
 0x1d3   : > { %v1144_v52 = vpop.permute.xlu1 %1143  ;;  %v3850_v24 = vpack.c.bf16 %v600_v2, %v600_v2  ;;  %v3866_v37 = vpack.c.bf16 %v604_v30, %v604_v30 }
 0x1d4   : > { %2727 = vst.msk [vmem:[%s3453_s30 + $0x84] sm:$0xf] %vm769_vm0, %v1144_v52  ;;  %v1142_v1 = vpop.permute.xlu0 %1141  ;;  %864 = vst.msk [vmem:[%s3471_s11 + $0x38] sm:$0xf] %vm769_vm0, %v3861_v17  ;;  %v3873_v42 = vpack.c.bf16 %v606_v14, %v606_v14 }
 0x1d5   : > { %1021 = vrot.lane.b32.xlu1 %v3588_v3, %s3191_s12  ;;  %2726 = vst.msk [vmem:[%s3453_s30 + $0x80] sm:$0xf] %vm769_vm0, %v1142_v1  ;;  %784 = vst.msk [vmem:[%s3453_s30 + $0x38] sm:$0xf] %vm769_vm0, %v3850_v24 }
 0x1d6   : > { %1092 = vrot.lane.b32.xlu0 %v3570_v63, %s3191_s12  ;;  %785 = vst.msk [vmem:[%s3453_s30 + $0x3c] sm:$0xf] %vm769_vm0, %v3866_v37  ;;  %865 = vst.msk [vmem:[%s3471_s11 + $0x3c] sm:$0xf] %vm769_vm0, %v3873_v42 }
 0x1d7   : > { %v1278_v20 = vpop.permute.xlu1 %1277 }
 0x1d8   : > { %2761 = vst.msk [vmem:[%s3459_s28 + $0x8c] sm:$0xf] %vm769_vm0, %v1278_v20  ;;  %v1276_v22 = vpop.permute.xlu0 %1275 }
 0x1d9   : > { %1094 = vrot.lane.b32.xlu1 %v3593_v6, %s3191_s12  ;;  %2760 = vst.msk [vmem:[%s3459_s28 + $0x88] sm:$0xf] %vm769_vm0, %v1276_v22 }
 0x1da   : > { %1214 = vrot.lane.b32.xlu0 %v3567_v61, %s3192_s8 }
 0x1db   : > { %v1339_v10 = vpop.permute.xlu1 %1338 }
 0x1dc   : > { %2775 = vst.msk [vmem:[%s3453_s30 + $0xc4] sm:$0xf] %vm769_vm0, %v1339_v10  ;;  %v1337_v55 = vpop.permute.xlu0 %1336 }
 0x1dd   : > { %1216 = vrot.lane.b32.xlu1 %v3588_v3, %s3192_s8  ;;  %2774 = vst.msk [vmem:[%s3453_s30 + $0xc0] sm:$0xf] %vm769_vm0, %v1337_v55 }
 0x1de   : > { %1287 = vrot.lane.b32.xlu0 %v3570_v63, %s3192_s8 }
 0x1df   : > { %v1473_v57 = vpop.permute.xlu1 %1472 }
 0x1e0   : > { %2809 = vst.msk [vmem:[%s3459_s28 + $0xcc] sm:$0xf] %vm769_vm0, %v1473_v57  ;;  %v1471_v43 = vpop.permute.xlu0 %1470 }
 0x1e1   : > { %1289 = vrot.lane.b32.xlu1 %v3593_v6, %s3192_s8  ;;  %2808 = vst.msk [vmem:[%s3459_s28 + $0xc8] sm:$0xf] %vm769_vm0, %v1471_v43 }
 0x1e2   : > { %1409 = vrot.lane.b32.xlu0 %v3567_v61, %s3193_s15 }
 0x1e3   : > { %v1014_v45 = vpop.permute.xlu1 %1013 }
 0x1e4   : > { %2695 = vst.msk [vmem:[%s3471_s11 + $0x44] sm:$0xf] %vm769_vm0, %v1014_v45  ;;  %v1012_v48 = vpop.permute.xlu0 %1011 }
 0x1e5   : > { %1411 = vrot.lane.b32.xlu1 %v3588_v3, %s3193_s15  ;;  %2694 = vst.msk [vmem:[%s3471_s11 + $0x40] sm:$0xf] %vm769_vm0, %v1012_v48 }
 0x1e6   : > { %1482 = vrot.lane.b32.xlu0 %v3570_v63, %s3193_s15 }
 0x1e7   : > { %v1079_v28 = vpop.permute.xlu1 %1078 }
 0x1e8   : > { %2711 = vst.msk [vmem:[%s3459_s28 + $0x44] sm:$0xf] %vm769_vm0, %v1079_v28  ;;  %v1077_v61 = vpop.permute.xlu0 %1076 }
 0x1e9   : > { %1484 = vrot.lane.b32.xlu1 %v3593_v6, %s3193_s15  ;;  %2710 = vst.msk [vmem:[%s3459_s28 + $0x40] sm:$0xf] %vm769_vm0, %v1077_v61 }
 0x1ea   : > { %958 = vrot.lane.b32.xlu0 %v3617_v21, %s3191_s12 }
 0x1eb   : > { %v1209_v38 = vpop.permute.xlu1 %1208 }
 0x1ec   : > { %2743 = vst.msk [vmem:[%s3471_s11 + $0x84] sm:$0xf] %vm769_vm0, %v1209_v38  ;;  %v1207_v63 = vpop.permute.xlu0 %1206 }
 0x1ed   : > { %960 = vrot.lane.b32.xlu1 %v3634_v32, %s3191_s12  ;;  %2742 = vst.msk [vmem:[%s3471_s11 + $0x80] sm:$0xf] %vm769_vm0, %v1207_v63 }
 0x1ee   : > { %1104 = vrot.lane.b32.xlu0 %v3620_v23, %s3191_s12 }
 0x1ef   : > { %v1274_v3 = vpop.permute.xlu1 %1273 }
 0x1f0   : > { %2759 = vst.msk [vmem:[%s3459_s28 + $0x84] sm:$0xf] %vm769_vm0, %v1274_v3  ;;  %v1272_v6 = vpop.permute.xlu0 %1271 }
 0x1f1   : > { %1106 = vrot.lane.b32.xlu1 %v3639_v33, %s3191_s12  ;;  %2758 = vst.msk [vmem:[%s3459_s28 + $0x80] sm:$0xf] %vm769_vm0, %v1272_v6 }
 0x1f2   : > { %1153 = vrot.lane.b32.xlu0 %v3617_v21, %s3192_s8 }
 0x1f3   : > { %v1404_v39 = vpop.permute.xlu1 %1403 }
 0x1f4   : > { %2791 = vst.msk [vmem:[%s3471_s11 + $0xc4] sm:$0xf] %vm769_vm0, %v1404_v39  ;;  %v1402_v49 = vpop.permute.xlu0 %1401 }
 0x1f5   : > { %1155 = vrot.lane.b32.xlu1 %v3634_v32, %s3192_s8  ;;  %2790 = vst.msk [vmem:[%s3471_s11 + $0xc0] sm:$0xf] %vm769_vm0, %v1402_v49 }
 0x1f6   : > { %1299 = vrot.lane.b32.xlu0 %v3620_v23, %s3192_s8 }
 0x1f7   : > { %v1469_v50 = vpop.permute.xlu1 %1468 }
 0x1f8   : > { %2807 = vst.msk [vmem:[%s3459_s28 + $0xc4] sm:$0xf] %vm769_vm0, %v1469_v50  ;;  %v1467_v51 = vpop.permute.xlu0 %1466 }
 0x1f9   : > { %1301 = vrot.lane.b32.xlu1 %v3639_v33, %s3192_s8  ;;  %2806 = vst.msk [vmem:[%s3459_s28 + $0xc0] sm:$0xf] %vm769_vm0, %v1467_v51 }
 0x1fa   : > { %1348 = vrot.lane.b32.xlu0 %v3617_v21, %s3193_s15 }
 0x1fb   : > { %v951_v54 = vpop.permute.xlu1 %950 }
 0x1fc   : > { %2680 = vst.msk [vmem:[%s3453_s30 + $0x48] sm:$0xf] %vm769_vm0, %v951_v54  ;;  %v949_v62 = vpop.permute.xlu0 %948 }
 0x1fd   : > { %1350 = vrot.lane.b32.xlu1 %v3634_v32, %s3193_s15  ;;  %2679 = vst.msk [vmem:[%s3453_s30 + $0x44] sm:$0xf] %vm769_vm0, %v949_v62 }
 0x1fe   : > { %1023 = vrot.lane.b32.xlu0 %v3623_v26, %s3191_s12 }
 0x1ff   : > { %v953_v34 = vpop.permute.xlu1 %952 }
 0x200   : > { %2681 = vst.msk [vmem:[%s3453_s30 + $0x4c] sm:$0xf] %vm769_vm0, %v953_v34  ;;  %v1089_v21 = vpop.permute.xlu0 %1088 }
 0x201   : > { %1025 = vrot.lane.b32.xlu1 %v3644_v35, %s3191_s12  ;;  %2716 = vst.msk [vmem:[%s3459_s28 + $0x58] sm:$0xf] %vm769_vm0, %v1089_v21 }
 0x202   : > { %1100 = vrot.lane.b32.xlu0 %v3626_v29, %s3191_s12 }
 0x203   : > { %v1091_v40 = vpop.permute.xlu1 %1090 }
 0x204   : > { %2717 = vst.msk [vmem:[%s3459_s28 + $0x5c] sm:$0xf] %vm769_vm0, %v1091_v40  ;;  %v1146_v32 = vpop.permute.xlu0 %1145 }
 0x205   : > { %1102 = vrot.lane.b32.xlu1 %v3649_v56, %s3191_s12  ;;  %2728 = vst.msk [vmem:[%s3453_s30 + $0x88] sm:$0xf] %vm769_vm0, %v1146_v32 }
 0x206   : > { %1218 = vrot.lane.b32.xlu0 %v3623_v26, %s3192_s8 }
 0x207   : > { %v1148_v41 = vpop.permute.xlu1 %1147 }
 0x208   : > { %2729 = vst.msk [vmem:[%s3453_s30 + $0x8c] sm:$0xf] %vm769_vm0, %v1148_v41  ;;  %v1284_v0 = vpop.permute.xlu0 %1283 }
 0x209   : > { %1220 = vrot.lane.b32.xlu1 %v3644_v35, %s3192_s8  ;;  %2764 = vst.msk [vmem:[%s3459_s28 + $0x98] sm:$0xf] %vm769_vm0, %v1284_v0 }
 0x20a   : > { %1295 = vrot.lane.b32.xlu0 %v3626_v29, %s3192_s8 }
 0x20b   : > { %v1286_v4 = vpop.permute.xlu1 %1285 }
 0x20c   : > { %2765 = vst.msk [vmem:[%s3459_s28 + $0x9c] sm:$0xf] %vm769_vm0, %v1286_v4  ;;  %v1341_v7 = vpop.permute.xlu0 %1340 }
 0x20d   : > { %1297 = vrot.lane.b32.xlu1 %v3649_v56, %s3192_s8  ;;  %2776 = vst.msk [vmem:[%s3453_s30 + $0xc8] sm:$0xf] %vm769_vm0, %v1341_v7 }
 0x20e   : > { %1413 = vrot.lane.b32.xlu0 %v3623_v26, %s3193_s15 }
 0x20f   : > { %v1343_v9 = vpop.permute.xlu1 %1342 }
 0x210   : > { %2777 = vst.msk [vmem:[%s3453_s30 + $0xcc] sm:$0xf] %vm769_vm0, %v1343_v9  ;;  %v1479_v15 = vpop.permute.xlu0 %1478 }
 0x211   : > { %1415 = vrot.lane.b32.xlu1 %v3644_v35, %s3193_s15  ;;  %2812 = vst.msk [vmem:[%s3459_s28 + $0xd8] sm:$0xf] %vm769_vm0, %v1479_v15 }
 0x212   : > { %1490 = vrot.lane.b32.xlu0 %v3626_v29, %s3193_s15 }
 0x213   : > { %v1481_v18 = vpop.permute.xlu1 %1480 }
 0x214   : > { %2813 = vst.msk [vmem:[%s3459_s28 + $0xdc] sm:$0xf] %vm769_vm0, %v1481_v18  ;;  %v1016_v26 = vpop.permute.xlu0 %1015 }
 0x215   : > { %1492 = vrot.lane.b32.xlu1 %v3649_v56, %s3193_s15  ;;  %2696 = vst.msk [vmem:[%s3471_s11 + $0x48] sm:$0xf] %vm769_vm0, %v1016_v26 }
 0x216   : > { %962 = vrot.lane.b32.xlu0 %v3694_v11, %s3191_s12 }
 0x217   : > { %v1018_v19 = vpop.permute.xlu1 %1017 }
 0x218   : > { %2697 = vst.msk [vmem:[%s3471_s11 + $0x4c] sm:$0xf] %vm769_vm0, %v1018_v19  ;;  %v1085_v29 = vpop.permute.xlu0 %1084 }
 0x219   : > { %964 = vrot.lane.b32.xlu1 %v3706_v46, %s3191_s12  ;;  %2714 = vst.msk [vmem:[%s3459_s28 + $0x50] sm:$0xf] %vm769_vm0, %v1085_v29 }
 0x21a   : > { %1157 = vrot.lane.b32.xlu0 %v3694_v11, %s3192_s8 }
 0x21b   : > { %v1087_v35 = vpop.permute.xlu1 %1086 }
 0x21c   : > { %2715 = vst.msk [vmem:[%s3459_s28 + $0x54] sm:$0xf] %vm769_vm0, %v1087_v35  ;;  %v1211_v56 = vpop.permute.xlu0 %1210 }
 0x21d   : > { %1159 = vrot.lane.b32.xlu1 %v3706_v46, %s3192_s8  ;;  %2744 = vst.msk [vmem:[%s3471_s11 + $0x88] sm:$0xf] %vm769_vm0, %v1211_v56 }
 0x21e   : > { %1352 = vrot.lane.b32.xlu0 %v3694_v11, %s3193_s15 }
 0x21f   : > { %v1213_v52 = vpop.permute.xlu1 %1212 }
 0x220   : > { %2745 = vst.msk [vmem:[%s3471_s11 + $0x8c] sm:$0xf] %vm769_vm0, %v1213_v52  ;;  %v1280_v1 = vpop.permute.xlu0 %1279 }
 0x221   : > { %1354 = vrot.lane.b32.xlu1 %v3706_v46, %s3193_s15  ;;  %2762 = vst.msk [vmem:[%s3459_s28 + $0x90] sm:$0xf] %vm769_vm0, %v1280_v1 }
 0x222   : > { %1027 = vrot.lane.b32.xlu0 %v3703_v44, %s3191_s12 }
 0x223   : > { %v1282_v58 = vpop.permute.xlu1 %1281 }
 0x224   : > { %2763 = vst.msk [vmem:[%s3459_s28 + $0x94] sm:$0xf] %vm769_vm0, %v1282_v58  ;;  %v1406_v11 = vpop.permute.xlu0 %1405 }
 0x225   : > { %1029 = vrot.lane.b32.xlu1 %v3713_v47, %s3191_s12  ;;  %2792 = vst.msk [vmem:[%s3471_s11 + $0xc8] sm:$0xf] %vm769_vm0, %v1406_v11 }
 0x226   : > { %1222 = vrot.lane.b32.xlu0 %v3703_v44, %s3192_s8 }
 0x227   : > { %v1408_v20 = vpop.permute.xlu1 %1407 }
 0x228   : > { %2793 = vst.msk [vmem:[%s3471_s11 + $0xcc] sm:$0xf] %vm769_vm0, %v1408_v20  ;;  %v1475_v46 = vpop.permute.xlu0 %1474 }
 0x229   : > { %1224 = vrot.lane.b32.xlu1 %v3713_v47, %s3192_s8  ;;  %2810 = vst.msk [vmem:[%s3459_s28 + $0xd0] sm:$0xf] %vm769_vm0, %v1475_v46 }
 0x22a   : > { %1417 = vrot.lane.b32.xlu0 %v3703_v44, %s3193_s15 }
 0x22b   : > { %v1477_v2 = vpop.permute.xlu1 %1476 }
 0x22c   : > { %2811 = vst.msk [vmem:[%s3459_s28 + $0xd4] sm:$0xf] %vm769_vm0, %v1477_v2  ;;  %v955_v5 = vpop.permute.xlu0 %954 }
 0x22d   : > { %1419 = vrot.lane.b32.xlu1 %v3713_v47, %s3193_s15  ;;  %2682 = vst.msk [vmem:[%s3453_s30 + $0x50] sm:$0xf] %vm769_vm0, %v955_v5 }
 0x22e   : > { %966 = vrot.lane.b32.xlu0 %v3742_v31, %s3191_s12 }
 0x22f   : > { %v957_v22 = vpop.permute.xlu1 %956 }
 0x230   : > { %2683 = vst.msk [vmem:[%s3453_s30 + $0x54] sm:$0xf] %vm769_vm0, %v957_v22  ;;  %v1097_v44 = vpop.permute.xlu0 %1096 }
 0x231   : > { %968 = vrot.lane.b32.xlu1 %v3754_v59, %s3191_s12  ;;  %2720 = vst.msk [vmem:[%s3459_s28 + $0x68] sm:$0xf] %vm769_vm0, %v1097_v44 }
 0x232   : > { %1161 = vrot.lane.b32.xlu0 %v3742_v31, %s3192_s8 }
 0x233   : > { %v1099_v25 = vpop.permute.xlu1 %1098 }
 0x234   : > { %2721 = vst.msk [vmem:[%s3459_s28 + $0x6c] sm:$0xf] %vm769_vm0, %v1099_v25  ;;  %v1150_v47 = vpop.permute.xlu0 %1149 }
 0x235   : > { %1163 = vrot.lane.b32.xlu1 %v3754_v59, %s3192_s8  ;;  %2730 = vst.msk [vmem:[%s3453_s30 + $0x90] sm:$0xf] %vm769_vm0, %v1150_v47 }
 0x236   : > { %1356 = vrot.lane.b32.xlu0 %v3742_v31, %s3193_s15 }
 0x237   : > { %v1152_v27 = vpop.permute.xlu1 %1151 }
 0x238   : > { %2731 = vst.msk [vmem:[%s3453_s30 + $0x94] sm:$0xf] %vm769_vm0, %v1152_v27  ;;  %v1292_v30 = vpop.permute.xlu0 %1291 }
 0x239   : > { %1358 = vrot.lane.b32.xlu1 %v3754_v59, %s3193_s15  ;;  %2768 = vst.msk [vmem:[%s3459_s28 + $0xa8] sm:$0xf] %vm769_vm0, %v1292_v30 }
 0x23a   : > { %1031 = vrot.lane.b32.xlu0 %v3751_v53, %s3191_s12 }
 0x23b   : > { %v1294_v16 = vpop.permute.xlu1 %1293 }
 0x23c   : > { %2769 = vst.msk [vmem:[%s3459_s28 + $0xac] sm:$0xf] %vm769_vm0, %v1294_v16  ;;  %v1345_v31 = vpop.permute.xlu0 %1344 }
 0x23d   : > { %1033 = vrot.lane.b32.xlu1 %v3761_v60, %s3191_s12  ;;  %2778 = vst.msk [vmem:[%s3453_s30 + $0xd0] sm:$0xf] %vm769_vm0, %v1345_v31 }
 0x23e   : > { %1226 = vrot.lane.b32.xlu0 %v3751_v53, %s3192_s8 }
 0x23f   : > { %v1347_v10 = vpop.permute.xlu1 %1346 }
 0x240   : > { %2779 = vst.msk [vmem:[%s3453_s30 + $0xd4] sm:$0xf] %vm769_vm0, %v1347_v10  ;;  %v1487_v59 = vpop.permute.xlu0 %1486 }
 0x241   : > { %1228 = vrot.lane.b32.xlu1 %v3761_v60, %s3192_s8  ;;  %2816 = vst.msk [vmem:[%s3459_s28 + $0xe8] sm:$0xf] %vm769_vm0, %v1487_v59 }
 0x242   : > { %1421 = vrot.lane.b32.xlu0 %v3751_v53, %s3193_s15 }
 0x243   : > { %v1489_v14 = vpop.permute.xlu1 %1488 }
 0x244   : > { %2817 = vst.msk [vmem:[%s3459_s28 + $0xec] sm:$0xf] %vm769_vm0, %v1489_v14  ;;  %v1020_v55 = vpop.permute.xlu0 %1019 }
 0x245   : > { %1423 = vrot.lane.b32.xlu1 %v3761_v60, %s3193_s15  ;;  %2698 = vst.msk [vmem:[%s3471_s11 + $0x50] sm:$0xf] %vm769_vm0, %v1020_v55 }
 0x246   : > { %970 = vrot.lane.b32.xlu0 %v3790_v36, %s3191_s12 }
 0x247   : > { %v1022_v57 = vpop.permute.xlu1 %1021 }
 0x248   : > { %2699 = vst.msk [vmem:[%s3471_s11 + $0x54] sm:$0xf] %vm769_vm0, %v1022_v57  ;;  %v1093_v53 = vpop.permute.xlu0 %1092 }
 0x249   : > { %972 = vrot.lane.b32.xlu1 %v3802_v12, %s3191_s12  ;;  %2718 = vst.msk [vmem:[%s3459_s28 + $0x60] sm:$0xf] %vm769_vm0, %v1093_v53 }
 0x24a   : > { %1165 = vrot.lane.b32.xlu0 %v3790_v36, %s3192_s8 }
 0x24b   : > { %v1095_v43 = vpop.permute.xlu1 %1094 }
 0x24c   : > { %2719 = vst.msk [vmem:[%s3459_s28 + $0x64] sm:$0xf] %vm769_vm0, %v1095_v43  ;;  %v1215_v60 = vpop.permute.xlu0 %1214 }
 0x24d   : > { %1167 = vrot.lane.b32.xlu1 %v3802_v12, %s3192_s8  ;;  %2746 = vst.msk [vmem:[%s3471_s11 + $0x90] sm:$0xf] %vm769_vm0, %v1215_v60 }
 0x24e   : > { %1360 = vrot.lane.b32.xlu0 %v3790_v36, %s3193_s15 }
 0x24f   : > { %v1217_v45 = vpop.permute.xlu1 %1216 }
 0x250   : > { %2747 = vst.msk [vmem:[%s3471_s11 + $0x94] sm:$0xf] %vm769_vm0, %v1217_v45  ;;  %v1288_v48 = vpop.permute.xlu0 %1287 }
 0x251   : > { %1362 = vrot.lane.b32.xlu1 %v3802_v12, %s3193_s15  ;;  %2766 = vst.msk [vmem:[%s3459_s28 + $0xa0] sm:$0xf] %vm769_vm0, %v1288_v48 }
 0x252   : > { %1035 = vrot.lane.b32.xlu0 %v3799_v8, %s3191_s12 }
 0x253   : > { %v1290_v28 = vpop.permute.xlu1 %1289 }
 0x254   : > { %2767 = vst.msk [vmem:[%s3459_s28 + $0xa4] sm:$0xf] %vm769_vm0, %v1290_v28  ;;  %v1410_v36 = vpop.permute.xlu0 %1409 }
 0x255   : > { %1037 = vrot.lane.b32.xlu1 %v3809_v13, %s3191_s12  ;;  %2794 = vst.msk [vmem:[%s3471_s11 + $0xd0] sm:$0xf] %vm769_vm0, %v1410_v36 }
 0x256   : > { %1230 = vrot.lane.b32.xlu0 %v3799_v8, %s3192_s8 }
 0x257   : > { %v1412_v61 = vpop.permute.xlu1 %1411 }
 0x258   : > { %2795 = vst.msk [vmem:[%s3471_s11 + $0xd4] sm:$0xf] %vm769_vm0, %v1412_v61  ;;  %v1483_v12 = vpop.permute.xlu0 %1482 }
 0x259   : > { %1232 = vrot.lane.b32.xlu1 %v3809_v13, %s3192_s8  ;;  %2814 = vst.msk [vmem:[%s3459_s28 + $0xe0] sm:$0xf] %vm769_vm0, %v1483_v12 }
 0x25a   : > { %1425 = vrot.lane.b32.xlu0 %v3799_v8, %s3193_s15 }
 0x25b   : > { %v1485_v38 = vpop.permute.xlu1 %1484 }
 0x25c   : > { %2815 = vst.msk [vmem:[%s3459_s28 + $0xe4] sm:$0xf] %vm769_vm0, %v1485_v38  ;;  %v959_v63 = vpop.permute.xlu0 %958 }
 0x25d   : > { %1427 = vrot.lane.b32.xlu1 %v3809_v13, %s3193_s15  ;;  %2684 = vst.msk [vmem:[%s3453_s30 + $0x58] sm:$0xf] %vm769_vm0, %v959_v63 }
 0x25e   : > { %974 = vrot.lane.b32.xlu0 %v3850_v24, %s3191_s12 }
 0x25f   : > { %v961_v3 = vpop.permute.xlu1 %960 }
 0x260   : > { %2685 = vst.msk [vmem:[%s3453_s30 + $0x5c] sm:$0xf] %vm769_vm0, %v961_v3  ;;  %v1105_v8 = vpop.permute.xlu0 %1104 }
 0x261   : > { %976 = vrot.lane.b32.xlu1 %v3866_v37, %s3191_s12  ;;  %2724 = vst.msk [vmem:[%s3459_s28 + $0x78] sm:$0xf] %vm769_vm0, %v1105_v8 }
 0x262   : > { %1169 = vrot.lane.b32.xlu0 %v3850_v24, %s3192_s8 }
 0x263   : > { %v1107_v6 = vpop.permute.xlu1 %1106 }
 0x264   : > { %2725 = vst.msk [vmem:[%s3459_s28 + $0x7c] sm:$0xf] %vm769_vm0, %v1107_v6  ;;  %v1154_v13 = vpop.permute.xlu0 %1153 }
 0x265   : > { %1171 = vrot.lane.b32.xlu1 %v3866_v37, %s3192_s8  ;;  %2732 = vst.msk [vmem:[%s3453_s30 + $0x98] sm:$0xf] %vm769_vm0, %v1154_v13 }
 0x266   : > { %1364 = vrot.lane.b32.xlu0 %v3850_v24, %s3193_s15 }
 0x267   : > { %v1156_v39 = vpop.permute.xlu1 %1155 }
 0x268   : > { %2733 = vst.msk [vmem:[%s3453_s30 + $0x9c] sm:$0xf] %vm769_vm0, %v1156_v39  ;;  %v1300_v49 = vpop.permute.xlu0 %1299 }
 0x269   : > { %1366 = vrot.lane.b32.xlu1 %v3866_v37, %s3193_s15  ;;  %2772 = vst.msk [vmem:[%s3459_s28 + $0xb8] sm:$0xf] %vm769_vm0, %v1300_v49 }
 0x26a   : > { %1039 = vrot.lane.b32.xlu0 %v3861_v17, %s3191_s12 }
 0x26b   : > { %v1302_v50 = vpop.permute.xlu1 %1301 }
 0x26c   : > { %2773 = vst.msk [vmem:[%s3459_s28 + $0xbc] sm:$0xf] %vm769_vm0, %v1302_v50  ;;  %v1349_v24 = vpop.permute.xlu0 %1348 }
 0x26d   : > { %1041 = vrot.lane.b32.xlu1 %v3873_v42, %s3191_s12  ;;  %2780 = vst.msk [vmem:[%s3453_s30 + $0xd8] sm:$0xf] %vm769_vm0, %v1349_v24  ;;  %v1566_v24 = vld [vmem:[%s3453_s30] sm:$0xff] (%p3325_p10)  }
 0x26e   : > { %1234 = vrot.lane.b32.xlu0 %v3861_v17, %s3192_s8  ;;  %1567 = vst [vmem:[%s4325_s4] sm:$0xff] (%p3325_p10), %v1566_v24  }
 0x26f   : > { %v1351_v51 = vpop.permute.xlu1 %1350 }
 0x270   : > { %2781 = vst.msk [vmem:[%s3453_s30 + $0xdc] sm:$0xf] %vm769_vm0, %v1351_v51  ;;  %v1024_v37 = vpop.permute.xlu0 %1023  ;;  %v1570_v51 = vld [vmem:[%s3453_s30 + $0x8] sm:$0xff] (%p3325_p10)  }
 0x271   : > { %1236 = vrot.lane.b32.xlu1 %v3873_v42, %s3192_s8  ;;  %2700 = vst.msk [vmem:[%s3471_s11 + $0x58] sm:$0xf] %vm769_vm0, %v1024_v37  ;;  %v1574_v37 = vld [vmem:[%s3453_s30 + $0x10] sm:$0xff] (%p3325_p10)   ;;  %1571 = vst [vmem:[%s4325_s4 + $0x8] sm:$0xff] (%p3325_p10), %v1570_v51  }
 0x272   : > { %1429 = vrot.lane.b32.xlu0 %v3861_v17, %s3193_s15  ;;  %1575 = vst [vmem:[%s4325_s4 + $0x10] sm:$0xff] (%p3325_p10), %v1574_v37  }
 0x273   : > { %v1026_v54 = vpop.permute.xlu1 %1025 }
 0x274   : > { %2701 = vst.msk [vmem:[%s3471_s11 + $0x5c] sm:$0xf] %vm769_vm0, %v1026_v54  ;;  %v1101_v62 = vpop.permute.xlu0 %1100  ;;  %v1578_v54 = vld [vmem:[%s3453_s30 + $0x18] sm:$0xff] (%p3325_p10)  }
 0x275   : > { %1431 = vrot.lane.b32.xlu1 %v3873_v42, %s3193_s15  ;;  %2722 = vst.msk [vmem:[%s3459_s28 + $0x70] sm:$0xf] %vm769_vm0, %v1101_v62  ;;  %v1582_v62 = vld [vmem:[%s3453_s30 + $0x20] sm:$0xff] (%p3325_p10)   ;;  %1579 = vst [vmem:[%s4325_s4 + $0x18] sm:$0xff] (%p3325_p10), %v1578_v54  }
 0x276   : > { %1494 = vrot.lane.b32.xlu0 %v3620_v23, %s3193_s15  ;;  %1583 = vst [vmem:[%s4325_s4 + $0x20] sm:$0xff] (%p3325_p10), %v1582_v62  }
 0x277   : > { %v1103_v34 = vpop.permute.xlu1 %1102 }
 0x278   : > { %2723 = vst.msk [vmem:[%s3459_s28 + $0x74] sm:$0xf] %vm769_vm0, %v1103_v34  ;;  %v1219_v17 = vpop.permute.xlu0 %1218  ;;  %v1586_v34 = vld [vmem:[%s3453_s30 + $0x28] sm:$0xff] (%p3325_p10)  }
 0x279   : > { %1496 = vrot.lane.b32.xlu1 %v3639_v33, %s3193_s15  ;;  %2748 = vst.msk [vmem:[%s3471_s11 + $0x98] sm:$0xf] %vm769_vm0, %v1219_v17  ;;  %v1590_v17 = vld [vmem:[%s3453_s30 + $0x30] sm:$0xff] (%p3325_p10)   ;;  %1587 = vst [vmem:[%s4325_s4 + $0x28] sm:$0xff] (%p3325_p10), %v1586_v34  }
 0x27a   : > { %1591 = vst [vmem:[%s4325_s4 + $0x30] sm:$0xff] (%p3325_p10), %v1590_v17  }
 0x27b   : > { %v1221_v42 = vpop.permute.xlu1 %1220 }
 0x27c   : > { %2749 = vst.msk [vmem:[%s3471_s11 + $0x9c] sm:$0xf] %vm769_vm0, %v1221_v42  ;;  %v1296_v21 = vpop.permute.xlu0 %1295  ;;  %v1594_v42 = vld [vmem:[%s3453_s30 + $0x38] sm:$0xff] (%p3325_p10)  }
 0x27d   : > { %2770 = vst.msk [vmem:[%s3459_s28 + $0xb0] sm:$0xf] %vm769_vm0, %v1296_v21  ;;  %v1598_v21 = vld [vmem:[%s3453_s30 + $0x40] sm:$0xff] (%p3325_p10)   ;;  %1595 = vst [vmem:[%s4325_s4 + $0x38] sm:$0xff] (%p3325_p10), %v1594_v42  }
 0x27e   : > { %1599 = vst [vmem:[%s4325_s4 + $0x80] sm:$0xff] (%p3325_p10), %v1598_v21  }
 0x27f   : > { %v1298_v23 = vpop.permute.xlu1 %1297 }
 0x280   : > { %2771 = vst.msk [vmem:[%s3459_s28 + $0xb4] sm:$0xf] %vm769_vm0, %v1298_v23  ;;  %v1414_v40 = vpop.permute.xlu0 %1413  ;;  %v1602_v23 = vld [vmem:[%s3453_s30 + $0x48] sm:$0xff] (%p3325_p10)  }
 0x281   : > { %2796 = vst.msk [vmem:[%s3471_s11 + $0xd8] sm:$0xf] %vm769_vm0, %v1414_v40  ;;  %v1606_v40 = vld [vmem:[%s3453_s30 + $0x50] sm:$0xff] (%p3325_p10)   ;;  %1603 = vst [vmem:[%s4325_s4 + $0x88] sm:$0xff] (%p3325_p10), %v1602_v23  }
 0x282   : > { %1607 = vst [vmem:[%s4325_s4 + $0x90] sm:$0xff] (%p3325_p10), %v1606_v40  }
 0x283   : > { %v1416_v33 = vpop.permute.xlu1 %1415 }
 0x284   : > { %2797 = vst.msk [vmem:[%s3471_s11 + $0xdc] sm:$0xf] %vm769_vm0, %v1416_v33  ;;  %v1491_v32 = vpop.permute.xlu0 %1490  ;;  %v1610_v33 = vld [vmem:[%s3453_s30 + $0x58] sm:$0xff] (%p3325_p10)  }
 0x285   : > { %2818 = vst.msk [vmem:[%s3459_s28 + $0xf0] sm:$0xf] %vm769_vm0, %v1491_v32  ;;  %1611 = vst [vmem:[%s4325_s4 + $0x98] sm:$0xff] (%p3325_p10), %v1610_v33  }
 0x287   : > { %v1493_v41 = vpop.permute.xlu1 %1492 }
 0x288   : > { %2819 = vst.msk [vmem:[%s3459_s28 + $0xf4] sm:$0xf] %vm769_vm0, %v1493_v41  ;;  %v963_v0 = vpop.permute.xlu0 %962 }
 0x289   : > { %2686 = vst.msk [vmem:[%s3453_s30 + $0x60] sm:$0xf] %vm769_vm0, %v963_v0 }
 0x28b   : > { %v965_v4 = vpop.permute.xlu1 %964 }
 0x28c   : > { %2687 = vst.msk [vmem:[%s3453_s30 + $0x64] sm:$0xf] %vm769_vm0, %v965_v4  ;;  %v1158_v7 = vpop.permute.xlu0 %1157 }
 0x28d   : > { %2734 = vst.msk [vmem:[%s3453_s30 + $0xa0] sm:$0xf] %vm769_vm0, %v1158_v7  ;;  %v1630_v7 = vld [vmem:[%s3453_s30 + $0x80] sm:$0xff] (%p3325_p10)  }
 0x28e   : > { %1631 = vst [vmem:[%s4325_s4 + $0x100] sm:$0xff] (%p3325_p10), %v1630_v7  }
 0x28f   : > { %v1160_v9 = vpop.permute.xlu1 %1159 }
 0x290   : > { %2735 = vst.msk [vmem:[%s3453_s30 + $0xa4] sm:$0xf] %vm769_vm0, %v1160_v9  ;;  %v1353_v15 = vpop.permute.xlu0 %1352  ;;  %v1634_v9 = vld [vmem:[%s3453_s30 + $0x88] sm:$0xff] (%p3325_p10)  }
 0x291   : > { %2782 = vst.msk [vmem:[%s3453_s30 + $0xe0] sm:$0xf] %vm769_vm0, %v1353_v15  ;;  %1635 = vst [vmem:[%s4325_s4 + $0x108] sm:$0xff] (%p3325_p10), %v1634_v9   ;;  %v1638_v15 = vld [vmem:[%s3453_s30 + $0x90] sm:$0xff] (%p3325_p10)  }
 0x292   : > { %1639 = vst [vmem:[%s4325_s4 + $0x110] sm:$0xff] (%p3325_p10), %v1638_v15  }
 0x293   : > { %v1355_v18 = vpop.permute.xlu1 %1354  ;;  %v1614_v32 = vld [vmem:[%s3453_s30 + $0x60] sm:$0xff] (%p3325_p10)  }
 0x294   : > { %2783 = vst.msk [vmem:[%s3453_s30 + $0xe4] sm:$0xf] %vm769_vm0, %v1355_v18  ;;  %v1028_v26 = vpop.permute.xlu0 %1027  ;;  %1615 = vst [vmem:[%s4325_s4 + $0xa0] sm:$0xff] (%p3325_p10), %v1614_v32   ;;  %v1642_v18 = vld [vmem:[%s3453_s30 + $0x98] sm:$0xff] (%p3325_p10)  }
 0x295   : > { %2702 = vst.msk [vmem:[%s3471_s11 + $0x60] sm:$0xf] %vm769_vm0, %v1028_v26  ;;  %1643 = vst [vmem:[%s4325_s4 + $0x118] sm:$0xff] (%p3325_p10), %v1642_v18  }
 0x297   : > { %v1030_v19 = vpop.permute.xlu1 %1029  ;;  %v1646_v26 = vld [vmem:[%s3453_s30 + $0xa0] sm:$0xff] (%p3325_p10)  }
 0x298   : > { %2703 = vst.msk [vmem:[%s3471_s11 + $0x64] sm:$0xf] %vm769_vm0, %v1030_v19  ;;  %v1223_v29 = vpop.permute.xlu0 %1222  ;;  %1647 = vst [vmem:[%s4325_s4 + $0x120] sm:$0xff] (%p3325_p10), %v1646_v26  }
 0x299   : > { %2750 = vst.msk [vmem:[%s3471_s11 + $0xa0] sm:$0xf] %vm769_vm0, %v1223_v29 }
 0x29b   : > { %v1225_v35 = vpop.permute.xlu1 %1224 }
 0x29c   : > { %2751 = vst.msk [vmem:[%s3471_s11 + $0xa4] sm:$0xf] %vm769_vm0, %v1225_v35  ;;  %v1418_v56 = vpop.permute.xlu0 %1417 }
 0x29d   : > { %2798 = vst.msk [vmem:[%s3471_s11 + $0xe0] sm:$0xf] %vm769_vm0, %v1418_v56  ;;  %v1662_v56 = vld [vmem:[%s3453_s30 + $0xc0] sm:$0xff] (%p3325_p10)  }
 0x29e   : > { %1663 = vst [vmem:[%s4325_s4 + $0x180] sm:$0xff] (%p3325_p10), %v1662_v56  }
 0x29f   : > { %v1420_v52 = vpop.permute.xlu1 %1419 }
 0x2a0   : > { %2799 = vst.msk [vmem:[%s3471_s11 + $0xe4] sm:$0xf] %vm769_vm0, %v1420_v52  ;;  %v967_v1 = vpop.permute.xlu0 %966  ;;  %v1666_v52 = vld [vmem:[%s3453_s30 + $0xc8] sm:$0xff] (%p3325_p10)  }
 0x2a1   : > { %2688 = vst.msk [vmem:[%s3453_s30 + $0x68] sm:$0xf] %vm769_vm0, %v967_v1  ;;  %v1670_v1 = vld [vmem:[%s3453_s30 + $0xd0] sm:$0xff] (%p3325_p10)   ;;  %1667 = vst [vmem:[%s4325_s4 + $0x188] sm:$0xff] (%p3325_p10), %v1666_v52  }
 0x2a2   : > { %1671 = vst [vmem:[%s4325_s4 + $0x190] sm:$0xff] (%p3325_p10), %v1670_v1  }
 0x2a3   : > { %v969_v58 = vpop.permute.xlu1 %968 }
 0x2a4   : > { %2689 = vst.msk [vmem:[%s3453_s30 + $0x6c] sm:$0xf] %vm769_vm0, %v969_v58  ;;  %v1162_v11 = vpop.permute.xlu0 %1161  ;;  %v1674_v58 = vld [vmem:[%s3453_s30 + $0xd8] sm:$0xff] (%p3325_p10)  }
 0x2a5   : > { %2736 = vst.msk [vmem:[%s3453_s30 + $0xa8] sm:$0xf] %vm769_vm0, %v1162_v11  ;;  %v1678_v11 = vld [vmem:[%s3453_s30 + $0xe0] sm:$0xff] (%p3325_p10)   ;;  %1675 = vst [vmem:[%s4325_s4 + $0x198] sm:$0xff] (%p3325_p10), %v1674_v58  }
 0x2a6   : > { %1679 = vst [vmem:[%s4325_s4 + $0x1a0] sm:$0xff] (%p3325_p10), %v1678_v11  }
 0x2a7   : > { %v1164_v20 = vpop.permute.xlu1 %1163 }
 0x2a8   : > { %2737 = vst.msk [vmem:[%s3453_s30 + $0xac] sm:$0xf] %vm769_vm0, %v1164_v20  ;;  %v1357_v46 = vpop.permute.xlu0 %1356 }
 0x2a9   : > { %2784 = vst.msk [vmem:[%s3453_s30 + $0xe8] sm:$0xf] %vm769_vm0, %v1357_v46 }
 0x2ab   : > { %v1359_v2 = vpop.permute.xlu1 %1358  ;;  %v1618_v41 = vld [vmem:[%s3453_s30 + $0x68] sm:$0xff] (%p3325_p10)  }
 0x2ac   : > { %2785 = vst.msk [vmem:[%s3453_s30 + $0xec] sm:$0xf] %vm769_vm0, %v1359_v2  ;;  %v1032_v5 = vpop.permute.xlu0 %1031  ;;  %1619 = vst [vmem:[%s4325_s4 + $0xa8] sm:$0xff] (%p3325_p10), %v1618_v41  }
 0x2ad   : > { %2704 = vst.msk [vmem:[%s3471_s11 + $0x68] sm:$0xf] %vm769_vm0, %v1032_v5 }
 0x2af   : > { %v1034_v22 = vpop.permute.xlu1 %1033  ;;  %v1650_v19 = vld [vmem:[%s3453_s30 + $0xa8] sm:$0xff] (%p3325_p10)  }
 0x2b0   : > { %2705 = vst.msk [vmem:[%s3471_s11 + $0x6c] sm:$0xf] %vm769_vm0, %v1034_v22  ;;  %v1227_v44 = vpop.permute.xlu0 %1226  ;;  %1651 = vst [vmem:[%s4325_s4 + $0x128] sm:$0xff] (%p3325_p10), %v1650_v19  }
 0x2b1   : > { %2752 = vst.msk [vmem:[%s3471_s11 + $0xa8] sm:$0xf] %vm769_vm0, %v1227_v44 }
 0x2b3   : > { %v1229_v25 = vpop.permute.xlu1 %1228  ;;  %v1682_v20 = vld [vmem:[%s3453_s30 + $0xe8] sm:$0xff] (%p3325_p10)  }
 0x2b4   : > { %2753 = vst.msk [vmem:[%s3471_s11 + $0xac] sm:$0xf] %vm769_vm0, %v1229_v25  ;;  %v1422_v47 = vpop.permute.xlu0 %1421  ;;  %1683 = vst [vmem:[%s4325_s4 + $0x1a8] sm:$0xff] (%p3325_p10), %v1682_v20  }
 0x2b5   : > { %2800 = vst.msk [vmem:[%s3471_s11 + $0xe8] sm:$0xf] %vm769_vm0, %v1422_v47 }
 0x2b7   : > { %v1424_v27 = vpop.permute.xlu1 %1423 }
 0x2b8   : > { %2801 = vst.msk [vmem:[%s3471_s11 + $0xec] sm:$0xf] %vm769_vm0, %v1424_v27  ;;  %v971_v30 = vpop.permute.xlu0 %970 }
 0x2b9   : > { %2690 = vst.msk [vmem:[%s3453_s30 + $0x70] sm:$0xf] %vm769_vm0, %v971_v30 }
 0x2bb   : > { %v973_v16 = vpop.permute.xlu1 %972 }
 0x2bc   : > { %2691 = vst.msk [vmem:[%s3453_s30 + $0x74] sm:$0xf] %vm769_vm0, %v973_v16  ;;  %v1166_v31 = vpop.permute.xlu0 %1165 }
 0x2bd   : > { %2738 = vst.msk [vmem:[%s3453_s30 + $0xb0] sm:$0xf] %vm769_vm0, %v1166_v31 }
 0x2bf   : > { %v1168_v10 = vpop.permute.xlu1 %1167 }
 0x2c0   : > { %2739 = vst.msk [vmem:[%s3453_s30 + $0xb4] sm:$0xf] %vm769_vm0, %v1168_v10  ;;  %v1361_v59 = vpop.permute.xlu0 %1360 }
 0x2c1   : > { %2786 = vst.msk [vmem:[%s3453_s30 + $0xf0] sm:$0xf] %vm769_vm0, %v1361_v59 }
 0x2c3   : > { %v1363_v14 = vpop.permute.xlu1 %1362  ;;  %v1622_v0 = vld [vmem:[%s3453_s30 + $0x70] sm:$0xff] (%p3325_p10)  }
 0x2c4   : > { %2787 = vst.msk [vmem:[%s3453_s30 + $0xf4] sm:$0xf] %vm769_vm0, %v1363_v14  ;;  %v1036_v55 = vpop.permute.xlu0 %1035  ;;  %1623 = vst [vmem:[%s4325_s4 + $0xb0] sm:$0xff] (%p3325_p10), %v1622_v0  }
 0x2c5   : > { %2706 = vst.msk [vmem:[%s3471_s11 + $0x70] sm:$0xf] %vm769_vm0, %v1036_v55 }
 0x2c7   : > { %v1038_v57 = vpop.permute.xlu1 %1037  ;;  %v1654_v29 = vld [vmem:[%s3453_s30 + $0xb0] sm:$0xff] (%p3325_p10)  }
 0x2c8   : > { %2707 = vst.msk [vmem:[%s3471_s11 + $0x74] sm:$0xf] %vm769_vm0, %v1038_v57  ;;  %v1231_v53 = vpop.permute.xlu0 %1230  ;;  %1655 = vst [vmem:[%s4325_s4 + $0x130] sm:$0xff] (%p3325_p10), %v1654_v29  }
 0x2c9   : > { %2754 = vst.msk [vmem:[%s3471_s11 + $0xb0] sm:$0xf] %vm769_vm0, %v1231_v53 }
 0x2cb   : > { %v1233_v43 = vpop.permute.xlu1 %1232  ;;  %v1686_v46 = vld [vmem:[%s3453_s30 + $0xf0] sm:$0xff] (%p3325_p10)  }
 0x2cc   : > { %2755 = vst.msk [vmem:[%s3471_s11 + $0xb4] sm:$0xf] %vm769_vm0, %v1233_v43  ;;  %v1426_v60 = vpop.permute.xlu0 %1425  ;;  %1687 = vst [vmem:[%s4325_s4 + $0x1b0] sm:$0xff] (%p3325_p10), %v1686_v46  }
 0x2cd   : > { %2802 = vst.msk [vmem:[%s3471_s11 + $0xf0] sm:$0xf] %vm769_vm0, %v1426_v60 }
 0x2cf   : > { %v1428_v45 = vpop.permute.xlu1 %1427 }
 0x2d0   : > { %2803 = vst.msk [vmem:[%s3471_s11 + $0xf4] sm:$0xf] %vm769_vm0, %v1428_v45  ;;  %v975_v48 = vpop.permute.xlu0 %974 }
 0x2d1   : > { %2692 = vst.msk [vmem:[%s3453_s30 + $0x78] sm:$0xf] %vm769_vm0, %v975_v48 }
 0x2d3   : > { %v977_v28 = vpop.permute.xlu1 %976 }
 0x2d4   : > { %2693 = vst.msk [vmem:[%s3453_s30 + $0x7c] sm:$0xf] %vm769_vm0, %v977_v28  ;;  %v1170_v36 = vpop.permute.xlu0 %1169 }
 0x2d5   : > { %2740 = vst.msk [vmem:[%s3453_s30 + $0xb8] sm:$0xf] %vm769_vm0, %v1170_v36 }
 0x2d7   : > { %v1172_v61 = vpop.permute.xlu1 %1171 }
 0x2d8   : > { %2741 = vst.msk [vmem:[%s3453_s30 + $0xbc] sm:$0xf] %vm769_vm0, %v1172_v61  ;;  %v1365_v12 = vpop.permute.xlu0 %1364 }
 0x2d9   : > { %2788 = vst.msk [vmem:[%s3453_s30 + $0xf8] sm:$0xf] %vm769_vm0, %v1365_v12 }
 0x2db   : > { %v1367_v38 = vpop.permute.xlu1 %1366  ;;  %v1626_v4 = vld [vmem:[%s3453_s30 + $0x78] sm:$0xff] (%p3325_p10)  }
 0x2dc   : > { %2789 = vst.msk [vmem:[%s3453_s30 + $0xfc] sm:$0xf] %vm769_vm0, %v1367_v38  ;;  %v1040_v63 = vpop.permute.xlu0 %1039  ;;  %1627 = vst [vmem:[%s4325_s4 + $0xb8] sm:$0xff] (%p3325_p10), %v1626_v4  }
 0x2dd   : > { %2708 = vst.msk [vmem:[%s3471_s11 + $0x78] sm:$0xf] %vm769_vm0, %v1040_v63 }
 0x2df   : > { %v1042_v3 = vpop.permute.xlu1 %1041  ;;  %v1658_v35 = vld [vmem:[%s3453_s30 + $0xb8] sm:$0xff] (%p3325_p10)  }
 0x2e0   : > { %2709 = vst.msk [vmem:[%s3471_s11 + $0x7c] sm:$0xf] %vm769_vm0, %v1042_v3  ;;  %v1235_v8 = vpop.permute.xlu0 %1234  ;;  %1659 = vst [vmem:[%s4325_s4 + $0x138] sm:$0xff] (%p3325_p10), %v1658_v35  }
 0x2e1   : > { %2756 = vst.msk [vmem:[%s3471_s11 + $0xb8] sm:$0xf] %vm769_vm0, %v1235_v8 }
 0x2e3   : > { %v1237_v6 = vpop.permute.xlu1 %1236  ;;  %v1690_v2 = vld [vmem:[%s3453_s30 + $0xf8] sm:$0xff] (%p3325_p10)  }
 0x2e4   : > { %2757 = vst.msk [vmem:[%s3471_s11 + $0xbc] sm:$0xf] %vm769_vm0, %v1237_v6  ;;  %v1430_v13 = vpop.permute.xlu0 %1429  ;;  %1691 = vst [vmem:[%s4325_s4 + $0x1b8] sm:$0xff] (%p3325_p10), %v1690_v2  }
 0x2e5   : > { %2804 = vst.msk [vmem:[%s3471_s11 + $0xf8] sm:$0xf] %vm769_vm0, %v1430_v13 }
 0x2e6   : > { %1545 = sbr.rel (!%p3325_p10) target bundleno = 749 (0x2ed), region = 44 }
 0x2e7   : > { %v1432_v39 = vpop.permute.xlu1 %1431 }
 0x2e8   : > { %2805 = vst.msk [vmem:[%s3471_s11 + $0xfc] sm:$0xf] %vm769_vm0, %v1432_v39  ;;  %v1495_v49 = vpop.permute.xlu0 %1494 }
 0x2e9   : > { %2820 = vst.msk [vmem:[%s3459_s28 + $0xf8] sm:$0xf] %vm769_vm0, %v1495_v49 }
 0x2eb   : > { %v1497_v50 = vpop.permute.xlu1 %1496 }
 0x2ec   : > { %2821 = vst.msk [vmem:[%s3459_s28 + $0xfc] sm:$0xf] %vm769_vm0, %v1497_v50 }
 0x2ed PF: > { %1844 = sbr.rel (!%p3325_p10) target bundleno = 773 (0x305), region = 85  ;;  %s2828_s5 = sshll.u32 (%p3325_p10), %s3166_s21, 4  ;;  %v1865_v5 = vld [vmem:[%s3471_s11] sm:$0xff] (%p3325_p10)   ;;  %v1869_v22 = vld [vmem:[%s3471_s11 + $0x8] sm:$0xff] (%p3325_p10)   ;;  %v1873_v44 = vld [vmem:[%s3471_s11 + $0x10] sm:$0xff] (%p3325_p10)  }
 0x2ee   : > { %s2829_s9 = sshll.u32 (%p3325_p10), %s3170_s22, 7  ;;  %v1877_v25 = vld [vmem:[%s3471_s11 + $0x18] sm:$0xff] (%p3325_p10)   ;;  %v1881_v47 = vld [vmem:[%s3471_s11 + $0x20] sm:$0xff] (%p3325_p10)   ;;  %v1885_v27 = vld [vmem:[%s3471_s11 + $0x28] sm:$0xff] (%p3325_p10)   ;;  %s4582_s12 = sld [smem:[#allocation14_spill]] (%p3325_p10) }
 0x2ef   : > { %s1847_s3 = sadd.s32 (%p3325_p10), %s2829_s9, %s2828_s5  ;;  %v1889_v30 = vld [vmem:[%s3471_s11 + $0x30] sm:$0xff] (%p3325_p10)   ;;  %v1893_v16 = vld [vmem:[%s3471_s11 + $0x38] sm:$0xff] (%p3325_p10)   ;;  %v1897_v31 = vld [vmem:[%s3471_s11 + $0x40] sm:$0xff] (%p3325_p10)  }
 0x2f0   : > { %s2830_s27 = sshll.u32 (%p3325_p10), %s1847_s3, 2  ;;  %v1901_v10 = vld [vmem:[%s3471_s11 + $0x48] sm:$0xff] (%p3325_p10)   ;;  %v1905_v59 = vld [vmem:[%s3471_s11 + $0x50] sm:$0xff] (%p3325_p10)   ;;  %v1909_v14 = vld [vmem:[%s3471_s11 + $0x58] sm:$0xff] (%p3325_p10)  }
 0x2f1   : > { %v1913_v55 = vld [vmem:[%s3471_s11 + $0x60] sm:$0xff] (%p3325_p10)   ;;  %v1917_v57 = vld [vmem:[%s3471_s11 + $0x68] sm:$0xff] (%p3325_p10)   ;;  %v1921_v53 = vld [vmem:[%s3471_s11 + $0x70] sm:$0xff] (%p3325_p10)  }
 0x2f2   : > { %v1925_v43 = vld [vmem:[%s3471_s11 + $0x78] sm:$0xff] (%p3325_p10)   ;;  %v1929_v60 = vld [vmem:[%s3471_s11 + $0x80] sm:$0xff] (%p3325_p10)   ;;  %v1933_v45 = vld [vmem:[%s3471_s11 + $0x88] sm:$0xff] (%p3325_p10)  }
 0x2f3   : > { %v1937_v48 = vld [vmem:[%s3471_s11 + $0x90] sm:$0xff] (%p3325_p10)   ;;  %v1941_v28 = vld [vmem:[%s3471_s11 + $0x98] sm:$0xff] (%p3325_p10)   ;;  %v1945_v36 = vld [vmem:[%s3471_s11 + $0xa0] sm:$0xff] (%p3325_p10)  }
 0x2f4   : > { %s4398_s8 = scalar_lea.vmem %s4582_s12, %s2830_s27  ;;  %v1949_v61 = vld [vmem:[%s3471_s11 + $0xa8] sm:$0xff]   ;;  %v1953_v12 = vld [vmem:[%s3471_s11 + $0xb0] sm:$0xff]   ;;  %v1957_v38 = vld [vmem:[%s3471_s11 + $0xb8] sm:$0xff]  }
 0x2f5   : > { %1866 = vst [vmem:[%s4398_s8] sm:$0xff] %v1865_v5   ;;  %1870 = vst [vmem:[%s4398_s8 + $0x8] sm:$0xff] %v1869_v22   ;;  %v1961_v63 = vld [vmem:[%s3471_s11 + $0xc0] sm:$0xff]   ;;  %v1965_v3 = vld [vmem:[%s3471_s11 + $0xc8] sm:$0xff]  }
 0x2f6   : > { %1874 = vst [vmem:[%s4398_s8 + $0x10] sm:$0xff] %v1873_v44   ;;  %1878 = vst [vmem:[%s4398_s8 + $0x18] sm:$0xff] %v1877_v25   ;;  %v1969_v8 = vld [vmem:[%s3471_s11 + $0xd0] sm:$0xff]   ;;  %v1973_v6 = vld [vmem:[%s3471_s11 + $0xd8] sm:$0xff]  }
 0x2f7   : > { %1882 = vst [vmem:[%s4398_s8 + $0x20] sm:$0xff] %v1881_v47   ;;  %1886 = vst [vmem:[%s4398_s8 + $0x28] sm:$0xff] %v1885_v27   ;;  %v1977_v13 = vld [vmem:[%s3471_s11 + $0xe0] sm:$0xff]   ;;  %v1981_v39 = vld [vmem:[%s3471_s11 + $0xe8] sm:$0xff]  }
 0x2f8   : > { %1890 = vst [vmem:[%s4398_s8 + $0x30] sm:$0xff] %v1889_v30   ;;  %1894 = vst [vmem:[%s4398_s8 + $0x38] sm:$0xff] %v1893_v16   ;;  %v1985_v49 = vld [vmem:[%s3471_s11 + $0xf0] sm:$0xff]   ;;  %v1989_v50 = vld [vmem:[%s3471_s11 + $0xf8] sm:$0xff]  }
 0x2f9   : > { %1898 = vst [vmem:[%s4398_s8 + $0x80] sm:$0xff] %v1897_v31   ;;  %1902 = vst [vmem:[%s4398_s8 + $0x88] sm:$0xff] %v1901_v10  }
 0x2fa   : > { %1906 = vst [vmem:[%s4398_s8 + $0x90] sm:$0xff] %v1905_v59   ;;  %1910 = vst [vmem:[%s4398_s8 + $0x98] sm:$0xff] %v1909_v14  }
 0x2fb   : > { %1914 = vst [vmem:[%s4398_s8 + $0xa0] sm:$0xff] %v1913_v55   ;;  %1918 = vst [vmem:[%s4398_s8 + $0xa8] sm:$0xff] %v1917_v57  }
 0x2fc   : > { %1922 = vst [vmem:[%s4398_s8 + $0xb0] sm:$0xff] %v1921_v53   ;;  %1926 = vst [vmem:[%s4398_s8 + $0xb8] sm:$0xff] %v1925_v43  }
 0x2fd   : > { %1930 = vst [vmem:[%s4398_s8 + $0x100] sm:$0xff] %v1929_v60   ;;  %1934 = vst [vmem:[%s4398_s8 + $0x108] sm:$0xff] %v1933_v45  }
 0x2fe   : > { %1938 = vst [vmem:[%s4398_s8 + $0x110] sm:$0xff] %v1937_v48   ;;  %1942 = vst [vmem:[%s4398_s8 + $0x118] sm:$0xff] %v1941_v28  }
 0x2ff   : > { %1946 = vst [vmem:[%s4398_s8 + $0x120] sm:$0xff] %v1945_v36   ;;  %1950 = vst [vmem:[%s4398_s8 + $0x128] sm:$0xff] %v1949_v61  }
 0x300   : > { %1954 = vst [vmem:[%s4398_s8 + $0x130] sm:$0xff] %v1953_v12   ;;  %1958 = vst [vmem:[%s4398_s8 + $0x138] sm:$0xff] %v1957_v38  }
 0x301   : > { %1962 = vst [vmem:[%s4398_s8 + $0x180] sm:$0xff] %v1961_v63   ;;  %1966 = vst [vmem:[%s4398_s8 + $0x188] sm:$0xff] %v1965_v3  }
 0x302   : > { %1970 = vst [vmem:[%s4398_s8 + $0x190] sm:$0xff] %v1969_v8   ;;  %1974 = vst [vmem:[%s4398_s8 + $0x198] sm:$0xff] %v1973_v6  }
 0x303   : > { %1978 = vst [vmem:[%s4398_s8 + $0x1a0] sm:$0xff] %v1977_v13   ;;  %1982 = vst [vmem:[%s4398_s8 + $0x1a8] sm:$0xff] %v1981_v39  }
 0x304   : > { %1986 = vst [vmem:[%s4398_s8 + $0x1b0] sm:$0xff] %v1985_v49   ;;  %1990 = vst [vmem:[%s4398_s8 + $0x1b8] sm:$0xff] %v1989_v50  }
 0x305 PF: > { %2143 = sbr.rel (!%p3325_p10) target bundleno = 797 (0x31d), region = 126  ;;  %s2831_s11 = sshll.u32 (%p3325_p10), %s3166_s21, 4  ;;  %v2164_v24 = vld [vmem:[%s3459_s28] sm:$0xff] (%p3325_p10)   ;;  %v2168_v51 = vld [vmem:[%s3459_s28 + $0x8] sm:$0xff] (%p3325_p10)   ;;  %v2172_v37 = vld [vmem:[%s3459_s28 + $0x10] sm:$0xff] (%p3325_p10)  }
 0x306   : > { %s2832_s15 = sshll.u32 (%p3325_p10), %s3170_s22, 7  ;;  %v2176_v54 = vld [vmem:[%s3459_s28 + $0x18] sm:$0xff] (%p3325_p10)   ;;  %v2180_v62 = vld [vmem:[%s3459_s28 + $0x20] sm:$0xff] (%p3325_p10)   ;;  %v2184_v34 = vld [vmem:[%s3459_s28 + $0x28] sm:$0xff] (%p3325_p10)   ;;  %s4583_s18 = sld [smem:[#allocation15_spill]] (%p3325_p10) }
 0x307   : > { %s2146_s7 = sadd.s32 (%p3325_p10), %s2832_s15, %s2831_s11  ;;  %v2188_v17 = vld [vmem:[%s3459_s28 + $0x30] sm:$0xff] (%p3325_p10)   ;;  %v2192_v42 = vld [vmem:[%s3459_s28 + $0x38] sm:$0xff] (%p3325_p10)   ;;  %v2196_v21 = vld [vmem:[%s3459_s28 + $0x40] sm:$0xff] (%p3325_p10)  }
 0x308   : > { %s2833_s13 = sshll.u32 (%p3325_p10), %s2146_s7, 2  ;;  %v2200_v23 = vld [vmem:[%s3459_s28 + $0x48] sm:$0xff] (%p3325_p10)   ;;  %v2204_v40 = vld [vmem:[%s3459_s28 + $0x50] sm:$0xff] (%p3325_p10)   ;;  %v2208_v33 = vld [vmem:[%s3459_s28 + $0x58] sm:$0xff] (%p3325_p10)  }
 0x309   : > { %v2212_v32 = vld [vmem:[%s3459_s28 + $0x60] sm:$0xff] (%p3325_p10)   ;;  %v2216_v41 = vld [vmem:[%s3459_s28 + $0x68] sm:$0xff] (%p3325_p10)   ;;  %v2220_v0 = vld [vmem:[%s3459_s28 + $0x70] sm:$0xff] (%p3325_p10)  }
 0x30a   : > { %v2224_v4 = vld [vmem:[%s3459_s28 + $0x78] sm:$0xff] (%p3325_p10)   ;;  %v2228_v7 = vld [vmem:[%s3459_s28 + $0x80] sm:$0xff] (%p3325_p10)   ;;  %v2232_v9 = vld [vmem:[%s3459_s28 + $0x88] sm:$0xff] (%p3325_p10)  }
 0x30b   : > { %v2236_v15 = vld [vmem:[%s3459_s28 + $0x90] sm:$0xff] (%p3325_p10)   ;;  %v2240_v18 = vld [vmem:[%s3459_s28 + $0x98] sm:$0xff] (%p3325_p10)   ;;  %v2244_v26 = vld [vmem:[%s3459_s28 + $0xa0] sm:$0xff] (%p3325_p10)  }
 0x30c   : > { %s4471_s26 = scalar_lea.vmem %s4583_s18, %s2833_s13  ;;  %v2248_v19 = vld [vmem:[%s3459_s28 + $0xa8] sm:$0xff]   ;;  %v2252_v29 = vld [vmem:[%s3459_s28 + $0xb0] sm:$0xff]   ;;  %v2256_v35 = vld [vmem:[%s3459_s28 + $0xb8] sm:$0xff]  }
 0x30d   : > { %2165 = vst [vmem:[%s4471_s26] sm:$0xff] %v2164_v24   ;;  %2169 = vst [vmem:[%s4471_s26 + $0x8] sm:$0xff] %v2168_v51   ;;  %v2260_v56 = vld [vmem:[%s3459_s28 + $0xc0] sm:$0xff]   ;;  %v2264_v52 = vld [vmem:[%s3459_s28 + $0xc8] sm:$0xff]  }
 0x30e   : > { %2173 = vst [vmem:[%s4471_s26 + $0x10] sm:$0xff] %v2172_v37   ;;  %2177 = vst [vmem:[%s4471_s26 + $0x18] sm:$0xff] %v2176_v54   ;;  %v2268_v1 = vld [vmem:[%s3459_s28 + $0xd0] sm:$0xff]   ;;  %v2272_v58 = vld [vmem:[%s3459_s28 + $0xd8] sm:$0xff]  }
 0x30f   : > { %2181 = vst [vmem:[%s4471_s26 + $0x20] sm:$0xff] %v2180_v62   ;;  %2185 = vst [vmem:[%s4471_s26 + $0x28] sm:$0xff] %v2184_v34   ;;  %v2276_v11 = vld [vmem:[%s3459_s28 + $0xe0] sm:$0xff]   ;;  %v2280_v20 = vld [vmem:[%s3459_s28 + $0xe8] sm:$0xff]  }
 0x310   : > { %2189 = vst [vmem:[%s4471_s26 + $0x30] sm:$0xff] %v2188_v17   ;;  %2193 = vst [vmem:[%s4471_s26 + $0x38] sm:$0xff] %v2192_v42   ;;  %v2284_v46 = vld [vmem:[%s3459_s28 + $0xf0] sm:$0xff]   ;;  %v2288_v2 = vld [vmem:[%s3459_s28 + $0xf8] sm:$0xff]  }
 0x311   : > { %2197 = vst [vmem:[%s4471_s26 + $0x80] sm:$0xff] %v2196_v21   ;;  %2201 = vst [vmem:[%s4471_s26 + $0x88] sm:$0xff] %v2200_v23  }
 0x312   : > { %2205 = vst [vmem:[%s4471_s26 + $0x90] sm:$0xff] %v2204_v40   ;;  %2209 = vst [vmem:[%s4471_s26 + $0x98] sm:$0xff] %v2208_v33  }
 0x313   : > { %2213 = vst [vmem:[%s4471_s26 + $0xa0] sm:$0xff] %v2212_v32   ;;  %2217 = vst [vmem:[%s4471_s26 + $0xa8] sm:$0xff] %v2216_v41  }
 0x314   : > { %2221 = vst [vmem:[%s4471_s26 + $0xb0] sm:$0xff] %v2220_v0   ;;  %2225 = vst [vmem:[%s4471_s26 + $0xb8] sm:$0xff] %v2224_v4  }
 0x315   : > { %2229 = vst [vmem:[%s4471_s26 + $0x100] sm:$0xff] %v2228_v7   ;;  %2233 = vst [vmem:[%s4471_s26 + $0x108] sm:$0xff] %v2232_v9  }
 0x316   : > { %2237 = vst [vmem:[%s4471_s26 + $0x110] sm:$0xff] %v2236_v15   ;;  %2241 = vst [vmem:[%s4471_s26 + $0x118] sm:$0xff] %v2240_v18  }
 0x317   : > { %2245 = vst [vmem:[%s4471_s26 + $0x120] sm:$0xff] %v2244_v26   ;;  %2249 = vst [vmem:[%s4471_s26 + $0x128] sm:$0xff] %v2248_v19  }
 0x318   : > { %2253 = vst [vmem:[%s4471_s26 + $0x130] sm:$0xff] %v2252_v29   ;;  %2257 = vst [vmem:[%s4471_s26 + $0x138] sm:$0xff] %v2256_v35  }
 0x319   : > { %2261 = vst [vmem:[%s4471_s26 + $0x180] sm:$0xff] %v2260_v56   ;;  %2265 = vst [vmem:[%s4471_s26 + $0x188] sm:$0xff] %v2264_v52  }
 0x31a   : > { %2269 = vst [vmem:[%s4471_s26 + $0x190] sm:$0xff] %v2268_v1   ;;  %2273 = vst [vmem:[%s4471_s26 + $0x198] sm:$0xff] %v2272_v58  }
 0x31b   : > { %2277 = vst [vmem:[%s4471_s26 + $0x1a0] sm:$0xff] %v2276_v11   ;;  %2281 = vst [vmem:[%s4471_s26 + $0x1a8] sm:$0xff] %v2280_v20  }
 0x31c   : > { %2285 = vst [vmem:[%s4471_s26 + $0x1b0] sm:$0xff] %v2284_v46   ;;  %2289 = vst [vmem:[%s4471_s26 + $0x1b8] sm:$0xff] %v2288_v2  }
 0x31d PF: > { %s20_s25 = sadd.s32 1, %s3182_s25   ;;  %s4584_s6 = sld [smem:[#allocation11_spill]] }
 0x31e   : > { %p17_p10 = scmp.ge.s32.totalorder %s20_s25, 6   ;;  %s4585_s18 = smov %s3158_s19 }
 0x31f   : > { %s4586_s19 = smov %s3162_s20  ;;  %s4587_s20 = smov %s3338_s1 }
 0x320   : > { %s4588_s21 = smov %s3174_s23  ;;  %s4589_s22 = smov %s3178_s24 }
 0x321   : > { %s4591_s24 = smov %s4597_s10  ;;  %19 = sbr.rel (!%p17_p10) target bundleno = 11 (0xb), region = 232 }
 0x323   : > { %s4590_s23 = smov %s4584_s6 }
 0x328   :  { %2466 = vsyncpa [#allocation3], 1 }
 0x329   :  { %2468 = vsyncpa [#allocation3 + $0x1], 1 }
 0x32a   :  { %2469 = vsyncpa [#allocation5], 1 }

</bundles_post_ra>
